<compile_context>
chip_gen: v6e
topology: v6e:2x2x1
jax: 0.10.0
libtpu: 0.0.40
codegen_flags: <defaults>
</compile_context>

<pallas_src>
import functools

import numpy as np
import jax
import jax.numpy as jnp
from jax.experimental import pallas as pl
from jax.experimental.pallas import tpu as pltpu


# ---------------------------------------------------------------------------
# Host-side helpers (pure numpy; all constants are grid-invariant)
# ---------------------------------------------------------------------------
def conv_out_len(lin, stride):
    # Conv1d with kernel_size=3, padding=1
    return (lin + 2 - 3) // stride + 1


def interp_matrix(lin, lout):
    """M (lout, lin) with M @ x == F.interpolate(x, lout, 'linear', align_corners=False)."""
    M = np.zeros((lout, lin), np.float32)
    scale = lin / lout
    for j in range(lout):
        src = max(scale * (j + 0.5) - 0.5, 0.0)
        i0 = min(int(np.floor(src)), lin - 1)
        frac = src - i0
        i1 = min(i0 + 1, lin - 1)
        M[j, i0] += 1.0 - frac
        M[j, i1] += frac
    return M


def conv_tap_selectors(lin, stride):
    """Three (lout, lin) 0/1 matrices S_k with (S_k @ x)[j] == x[stride*j + k - 1]
    (zero row when the tap falls into the conv's zero padding)."""
    lout = conv_out_len(lin, stride)
    sels = []
    for k in range(3):
        S = np.zeros((lout, lin), np.float32)
        for j in range(lout):
            src = stride * j + k - 1
            if 0 <= src < lin:
                S[j, src] = 1.0
        sels.append(S)
    return sels


_ROW_ALIGN = 16  # bf16 sublane packing is (16, 128): keep every slab block tile-aligned


def _pack_rows(mats, lane_width):
    """Stack 2-D matrices row-wise into one (rows, lane_width) slab.
    Returns (slab, {name: (row_off, rows, cols)})."""
    layout, blocks, row = {}, [], 0
    for name, m in mats:
        m = np.asarray(m, np.float32)
        r, c = m.shape
        assert c <= lane_width
        rp = r + (-r) % _ROW_ALIGN
        blk = np.zeros((rp, lane_width), np.float32)
        blk[:r, :c] = m
        blocks.append(blk)
        layout[name] = (row, r, c)
        row += rp
    return np.concatenate(blocks, axis=0), layout


def _pack_bias(vecs):
    """Pack 1-D bias vectors into one (1, W) f32 row at 128-lane-aligned offsets."""
    layout, off = {}, 0
    for name, v in vecs:
        n = int(np.asarray(v).shape[0])
        layout[name] = (off, n)
        off += n + (-n) % 128
    buf = np.zeros((1, off), np.float32)
    for name, v in vecs:
        o, n = layout[name]
        buf[0, o:o + n] = np.asarray(v, np.float32)
    return buf, layout


# ---------------------------------------------------------------------------
# Pallas kernel: full FPN1D forward for a block of Bt batch elements
# ---------------------------------------------------------------------------
def fpn1d_kernel(x_ref, slab_a_ref, slab_b_ref, bias_ref, out_ref, *,
                 layout, bias_layout):
    f32, bf16 = jnp.float32, jnp.bfloat16
    slabs = (slab_a_ref, slab_b_ref)

    def W(name):                      # static bf16 sub-view of a packed slab
        sid, off, r, c = layout[name]
        return slabs[sid][off:off + r, 0:c]

    def bvec(name):                   # f32 (1, n) bias row
        off, n = bias_layout[name]
        return bias_ref[:, off:off + n]

    def mm(a, b):                     # bf16 x bf16 -> f32 accumulation on the MXU
        return jnp.dot(a, b, preferred_element_type=f32)

    def conv_s2(act_b, p):
        # Conv1d(k=3, stride=2, pad=1) as three accumulated matmuls; S_k folds the
        # stride-2 row selection, boundary zeros and the batch block-diagonal.
        acc = mm(mm(W(f"s{p}_0"), act_b).astype(bf16), W(f"w{p}_0"))
        for k in (1, 2):
            acc = acc + mm(mm(W(f"s{p}_{k}"), act_b).astype(bf16), W(f"w{p}_{k}"))
        return acc

    x = x_ref[...]                                               # (Bt*L, 3*Cin) bf16, im2col'd host-side

    # Bottom-up path.
    c1 = jnp.maximum(mm(x, W("wc1")) + bvec("b1"), 0.0)          # (Bt*L,  64)
    c1b = c1.astype(bf16)
    c2 = jnp.maximum(conv_s2(c1b, "2") + bvec("b2"), 0.0)        # (Bt*L2, 128)
    c2b = c2.astype(bf16)
    c3 = jnp.maximum(conv_s2(c2b, "3") + bvec("b3"), 0.0)        # (Bt*L3, 256)
    c3b = c3.astype(bf16)

    # Top-down path.  Linear interpolation (align_corners=False) is a tiny
    # block-diagonal matmul whose rows sum to 1, so the up-conv biases were
    # folded into b22/b11 host-side.
    u2 = mm(c3b, W("wu2")).astype(bf16)                                         # (Bt*L3, 128)
    p2 = jnp.maximum(mm(W("u2"), u2) + mm(c2b, W("wl2")) + bvec("b22"), 0.0)    # (Bt*L2, 128)
    p2b = p2.astype(bf16)
    u1 = mm(p2b, W("wu1")).astype(bf16)                                         # (Bt*L2,  64)
    p1 = jnp.maximum(mm(W("u1"), u1) + mm(c1b, W("wl1")) + bvec("b11"), 0.0)    # (Bt*L,   64)
    p1b = p1.astype(bf16)

    # Head: out[b] = flatten(p1[b]) @ (Wfc @ Wout) + (Wout @ bfc + bout).
    # TODO(synk): the reference forward calls self.fc(p1) on a (B,64,L) tensor, which
    # is shape-invalid for Linear(64*L,128); we implement the evident intent
    # fc(p1.view(B,-1)) (channel-major flatten, matching real PyTorch weights).
    pwide = mm(p1b, W("whead")).astype(bf16)      # (Bt*L, L*NC)
    masked = pwide * W("mdiag")                   # keep only each row's own-timestep block
    perb = mm(W("lsum"), masked).astype(bf16)     # (Bt, L*NC): sum over time per sample
    out = mm(perb, W("rstack")) + bvec("bhead")   # (Bt, 128): lane groups -> classes (padded)
    out_ref[0] = out


# ---------------------------------------------------------------------------
# Host-side conversion of PyTorch-layout parameters into packed kernel constants
# ---------------------------------------------------------------------------
def _prepare_constants(params, bt, seq_len, num_classes):
    L, nc = seq_len, num_classes
    L2 = conv_out_len(L, 2)
    L3 = conv_out_len(L2, 2)
    eye_b = np.eye(bt, dtype=np.float32)

    def np64(a):
        return np.asarray(a, np.float64)

    mats = []

    # conv1 weight in im2col layout (3*Cin, 64); im2col itself is hoisted host-side.
    w1 = np.asarray(params["conv1_w"], np.float32)                    # (64, Cin, 3)
    mats.append(("wc1", w1.transpose(2, 1, 0).reshape(-1, w1.shape[0])))

    # conv2 / conv3: per-tap weight + per-tap 0/1 row selector.
    for p, lin, wkey in (("2", L, "conv2_w"), ("3", L2, "conv3_w")):
        w = np.asarray(params[wkey], np.float32)                      # (Cout, Cin, 3)
        sels = conv_tap_selectors(lin, 2)
        for k in range(3):
            mats.append((f"w{p}_{k}", w[:, :, k].T))                  # (Cin, Cout)
            mats.append((f"s{p}_{k}", np.kron(eye_b, sels[k])))       # (Bt*Lout, Bt*Lin)

    def w1x1(name):                                                   # (Cout, Cin, 1) -> (Cin, Cout)
        return np.asarray(params[name], np.float32)[:, :, 0].T

    mats += [
        ("wl2", w1x1("lateral2_w")), ("wl1", w1x1("lateral1_w")),
        ("wu2", w1x1("up2_w")), ("wu1", w1x1("up1_w")),
        # Linear interpolation and per-sample time-sum as block-diagonal matmuls.
        # TODO(synk): these are O((Bt*L)^2); switch to per-sample batched einsum if
        # Bt*L is ever scaled toward >=256 for MXU fill.
        ("u2", np.kron(eye_b, interp_matrix(L3, L2))),                # (Bt*L2, Bt*L3)
        ("u1", np.kron(eye_b, interp_matrix(L2, L))),                 # (Bt*L,  Bt*L2)
        ("lsum", np.kron(eye_b, np.ones((1, L), np.float32))),        # (Bt, Bt*L)
    ]

    # Head: fold fc and out into per-timestep (64, NC) blocks laid out along lanes;
    # flatten order matches torch's channel-major p1.view(B, -1): index = c*L + t.
    wfc3 = np64(params["fc_w"]).reshape(128, 64, L).transpose(2, 1, 0)   # (L, 64, 128)
    wcomb = np.einsum("tcf,nf->tcn", wfc3, np64(params["out_w"]))        # (L, 64, NC)
    whead = wcomb.transpose(1, 0, 2).reshape(64, L * nc)                 # (64, L*NC)
    mdiag = np.tile(np.kron(np.eye(L, dtype=np.float32),
                            np.ones((1, nc), np.float32)), (bt, 1))      # (Bt*L, L*NC)
    rstack = np.zeros((L * nc, 128), np.float32)                         # (L*NC, 128) padded
    rstack[np.arange(L * nc), np.tile(np.arange(nc), L)] = 1.0
    mats += [("whead", whead), ("mdiag", mdiag), ("rstack", rstack)]

    wide = [(n, np.asarray(m, np.float32)) for n, m in mats if np.asarray(m).shape[1] > 128]
    narrow = [(n, np.asarray(m, np.float32)) for n, m in mats if np.asarray(m).shape[1] <= 128]
    if not wide:
        wide = [("_unused", np.zeros((_ROW_ALIGN, 128), np.float32))]
    wide_lanes = int(-(-max(m.shape[1] for _, m in wide) // 128) * 128)
    slab_a, lay_a = _pack_rows(wide, wide_lanes)
    slab_b, lay_b = _pack_rows(narrow, 128)
    layout = {n: (0,) + v for n, v in lay_a.items()}
    layout.update({n: (1,) + v for n, v in lay_b.items()})

    # f32 biases.  Interp rows sum to 1 so the up-conv biases fold into the lateral
    # ones; fc/out biases fold into one head bias padded to 128 lanes.
    bhead = np.zeros((128,), np.float32)
    bhead[:nc] = (np64(params["out_w"]) @ np64(params["fc_b"])
                  + np64(params["out_b"])).astype(np.float32)
    bias, lay_bias = _pack_bias([
        ("b1", params["conv1_b"]), ("b2", params["conv2_b"]), ("b3", params["conv3_b"]),
        ("b22", np.asarray(params["lateral2_b"], np.float32)
                + np.asarray(params["up2_b"], np.float32)),
        ("b11", np.asarray(params["lateral1_b"], np.float32)
                + np.asarray(params["up1_b"], np.float32)),
        ("bhead", bhead),
    ])

    consts = (jnp.asarray(slab_a, jnp.bfloat16),
              jnp.asarray(slab_b, jnp.bfloat16),
              jnp.asarray(bias, jnp.float32))
    return consts, layout, lay_bias


# ---------------------------------------------------------------------------
# Wrapper
# ---------------------------------------------------------------------------
def fpn1d_forward(x, params, *, block_batch=None):
    """x: (B, L, C_in) — the tensor the PyTorch module receives before its permute."""
    B, L, Cin = x.shape
    NC = int(params["out_w"].shape[0])
    assert NC <= 128

    if block_batch is None:
        # Single-TensorCore parts (v5e/v6e): 1 grid step (extra serial steps are pure
        # overhead).  Dual-core parts (v7x / megacore): keep 2 "parallel" steps.
        kind = ""
        try:
            kind = jax.devices()[0].device_kind.lower()
        except Exception:
            pass
        two_core = any(tag in kind for tag in ("v7", "7x", "v4", "v5p"))
        steps = 2 if (two_core and B >= 2) else 1
        block_batch = -(-B // steps)
    Bt = max(1, int(block_batch))
    while (Bt * L) % 8 != 0:          # keep the sublane dim aligned; pad batch if needed
        Bt += 1
    steps = -(-B // Bt)
    Bp = steps * Bt

    consts, layout, bias_layout = _prepare_constants(params, Bt, L, NC)
    slab_a, slab_b, bias = consts

    # Host-side im2col for conv1: taps [t-1 | t | t+1] along lanes, zero-padded at
    # per-sample edges, flattened to (sample, time) rows, bf16 MXU operands.
    xp = jnp.pad(x.astype(jnp.float32), ((0, Bp - B), (1, 1), (0, 0)))
    x_rows = jnp.concatenate([xp[:, :L], xp[:, 1:L + 1], xp[:, 2:]], axis=-1)
    x_rows = x_rows.reshape(Bp * L, 3 * Cin).astype(jnp.bfloat16)

    kernel = functools.partial(fpn1d_kernel, layout=layout, bias_layout=bias_layout)
    out = pl.pallas_call(
        kernel,
        out_shape=jax.ShapeDtypeStruct((steps, Bt, 128), jnp.float32),
        grid=(steps,),
        in_specs=[
            pl.BlockSpec((Bt * L, 3 * Cin), lambda i: (i, 0)),
            pl.BlockSpec(slab_a.shape, lambda i: (0, 0)),
            pl.BlockSpec(slab_b.shape, lambda i: (0, 0)),
            pl.BlockSpec(bias.shape, lambda i: (0, 0)),
        ],
        out_specs=pl.BlockSpec((1, Bt, 128), lambda i: (i, 0, 0)),
        compiler_params=pltpu.CompilerParams(dimension_semantics=("parallel",)),
    )(x_rows, slab_a, slab_b, bias)
    return out.reshape(Bp, 128)[:B, :NC]


# ---------------------------------------------------------------------------
# Pure-JAX f32 reference (mirrors the PyTorch module) and synthetic parameters
# ---------------------------------------------------------------------------
def fpn1d_reference(x, params):
    hi = jax.lax.Precision.HIGHEST
    xt = jnp.transpose(x, (0, 2, 1))                                     # (B, Cin, L)

    def conv1d(inp, w, b, stride):
        _, _, lin = inp.shape
        lout = conv_out_len(lin, stride)
        xp = jnp.pad(inp, ((0, 0), (0, 0), (1, 1)))
        idx = stride * jnp.arange(lout)[:, None] + jnp.arange(3)[None, :]
        tapped = xp[:, :, idx]                                           # (B, Cin, Lout, 3)
        return jnp.einsum("bcjk,ock->boj", tapped, w, precision=hi) + b[None, :, None]

    def conv1x1(inp, w, b):
        return jnp.einsum("bcl,oc->bol", inp, w[:, :, 0], precision=hi) + b[None, :, None]

    c1 = jax.nn.relu(conv1d(xt, params["conv1_w"], params["conv1_b"], 1))
    c2 = jax.nn.relu(conv1d(c1, params["conv2_w"], params["conv2_b"], 2))
    c3 = jax.nn.relu(conv1d(c2, params["conv3_w"], params["conv3_b"], 2))

    p2 = conv1x1(c3, params["up2_w"], params["up2_b"])
    m2 = jnp.asarray(interp_matrix(c3.shape[2], c2.shape[2]))
    p2 = jnp.einsum("jl,bcl->bcj", m2, p2, precision=hi)
    p2 = jax.nn.relu(p2 + conv1x1(c2, params["lateral2_w"], params["lateral2_b"]))

    p1 = conv1x1(p2, params["up1_w"], params["up1_b"])
    m1 = jnp.asarray(interp_matrix(c2.shape[2], c1.shape[2]))
    p1 = jnp.einsum("jl,bcl->bcj", m1, p1, precision=hi)
    p1 = jax.nn.relu(p1 + conv1x1(c1, params["lateral1_w"], params["lateral1_b"]))

    r1 = p1.reshape(p1.shape[0], -1)                                     # channel-major flatten
    feats = jnp.dot(r1, params["fc_w"].T, precision=hi) + params["fc_b"]
    return jnp.dot(feats, params["out_w"].T, precision=hi) + params["out_b"]


def init_params(key, input_channels, sequence_length, num_classes=4):
    """Deterministic synthetic parameters in PyTorch layout (Conv1d: (Cout,Cin,K), Linear: (out,in))."""
    ks = jax.random.split(key, 18)

    def w(k, shape, scale=0.1):
        return (scale * jax.random.normal(k, shape)).astype(jnp.float32)

    L = sequence_length
    return dict(
        conv1_w=w(ks[0], (64, input_channels, 3)),  conv1_b=w(ks[1], (64,), 0.02),
        conv2_w=w(ks[2], (128, 64, 3)),             conv2_b=w(ks[3], (128,), 0.02),
        conv3_w=w(ks[4], (256, 128, 3)),            conv3_b=w(ks[5], (256,), 0.02),
        lateral2_w=w(ks[6], (128, 128, 1)),         lateral2_b=w(ks[7], (128,), 0.02),
        lateral1_w=w(ks[8], (64, 64, 1)),           lateral1_b=w(ks[9], (64,), 0.02),
        up2_w=w(ks[10], (128, 256, 1)),             up2_b=w(ks[11], (128,), 0.02),
        up1_w=w(ks[12], (64, 128, 1)),              up1_b=w(ks[13], (64,), 0.02),
        fc_w=w(ks[14], (128, 64 * L), 0.02),        fc_b=w(ks[15], (128,), 0.02),
        out_w=w(ks[16], (num_classes, 128)),        out_b=w(ks[17], (num_classes,), 0.02),
    )


if __name__ == "__main__":
    B, L, Cin, NC = 8, 16, 4, 4          # batch, sequence_length, input_channels, classes
    key = jax.random.PRNGKey(0)
    kx, kp = jax.random.split(key)
    x = jax.random.normal(kx, (B, L, Cin), jnp.float32)   # (B, L, C_in), pre-permute layout
    params = init_params(kp, Cin, L, NC)

    out = jax.block_until_ready(fpn1d_forward(x, params))
    assert out.shape == (B, NC) and out.dtype == jnp.float32

    ref = jax.block_until_ready(fpn1d_reference(x, params))
    err = float(jnp.max(jnp.abs(out - ref)))
    # bf16 MXU operands with f32 accumulation: allow a few bf16 ulps through the net.
    assert err < 2e-2, f"kernel/reference mismatch: max abs err = {err}"
    print("KERNEL_OK")
</pallas_src>

<mosaic_0001>
module attributes {stable_mosaic.version = 11 : i64} {
  func.func @fpn1d_kernel(%arg0: i32, %arg1: memref<128x12xbf16, #tpu.memory_space<vmem>>, %arg2: memref<384x256xbf16, #tpu.memory_space<vmem>>, %arg3: memref<1536x128xbf16, #tpu.memory_space<vmem>>, %arg4: memref<1x896xf32, #tpu.memory_space<vmem>>, %arg5: memref<1x8x128xf32, #tpu.memory_space<vmem>>) attributes {dimension_semantics = [#tpu.dimension_semantics<parallel>], iteration_bounds = array<i64: 1>, scalar_prefetch = 0 : i64, scratch_operands = 0 : i64, tpu.core_type = #tpu.core_type<tc>, window_params = [{transform_indices = @transform_0, window_bounds = array<i64: 128, 12>}, {pipeline_mode = #tpu.pipeline_mode<synchronous>, transform_indices = @transform_1, window_bounds = array<i64: 384, 256>}, {pipeline_mode = #tpu.pipeline_mode<synchronous>, transform_indices = @transform_2, window_bounds = array<i64: 1536, 128>}, {pipeline_mode = #tpu.pipeline_mode<synchronous>, transform_indices = @transform_3, window_bounds = array<i64: 1, 896>}, {transform_indices = @transform_4, window_bounds = array<i64: 1, 8, 128>}]} {
    %c0 = arith.constant 0 : index
    %c0_0 = arith.constant 0 : index
    %0 = vector.load %arg1[%c0, %c0_0] : memref<128x12xbf16, #tpu.memory_space<vmem>>, vector<128x12xbf16>
    %c0_1 = arith.constant 0 : index
    %c0_2 = arith.constant 0 : index
    %1 = vector.load %arg3[%c0_1, %c0_2] : memref<1536x128xbf16, #tpu.memory_space<vmem>>, vector<12x64xbf16>
    %cst = arith.constant dense<0.000000e+00> : vector<128x64xf32>
    %2 = tpu.matmul %0, %1, %cst {dimension_numbers = #tpu.dot_dimension_numbers<[1], [0], [0], [1], [0, 0, 1, 1], [], []>} : vector<128x12xbf16>, vector<12x64xbf16>, vector<128x64xf32> -> vector<128x64xf32>
    %c0_3 = arith.constant 0 : index
    %c0_4 = arith.constant 0 : index
    %3 = vector.load %arg4[%c0_3, %c0_4] : memref<1x896xf32, #tpu.memory_space<vmem>>, vector<1x64xf32>
    %4 = vector.broadcast %3 : vector<1x64xf32> to vector<128x64xf32>
    %5 = arith.addf %2, %4 : vector<128x64xf32>
    %cst_5 = arith.constant 0.000000e+00 : f32
    %6 = vector.broadcast %cst_5 : f32 to vector<128x64xf32>
    %7 = arith.maximumf %5, %6 : vector<128x64xf32>
    %8 = arith.truncf %7 : vector<128x64xf32> to vector<128x64xbf16>
    %c80 = arith.constant 80 : index
    %c0_6 = arith.constant 0 : index
    %9 = vector.load %arg3[%c80, %c0_6] : memref<1536x128xbf16, #tpu.memory_space<vmem>>, vector<64x128xbf16>
    %cst_7 = arith.constant dense<0.000000e+00> : vector<64x64xf32>
    %10 = tpu.matmul %9, %8, %cst_7 {dimension_numbers = #tpu.dot_dimension_numbers<[1], [0], [0], [1], [0, 0, 1, 1], [], []>} : vector<64x128xbf16>, vector<128x64xbf16>, vector<64x64xf32> -> vector<64x64xf32>
    %11 = arith.truncf %10 : vector<64x64xf32> to vector<64x64xbf16>
    %c16 = arith.constant 16 : index
    %c0_8 = arith.constant 0 : index
    %12 = vector.load %arg3[%c16, %c0_8] : memref<1536x128xbf16, #tpu.memory_space<vmem>>, vector<64x128xbf16>
    %cst_9 = arith.constant dense<0.000000e+00> : vector<64x128xf32>
    %13 = tpu.matmul %11, %12, %cst_9 {dimension_numbers = #tpu.dot_dimension_numbers<[1], [0], [0], [1], [0, 0, 1, 1], [], []>} : vector<64x64xbf16>, vector<64x128xbf16>, vector<64x128xf32> -> vector<64x128xf32>
    %c208 = arith.constant 208 : index
    %c0_10 = arith.constant 0 : index
    %14 = vector.load %arg3[%c208, %c0_10] : memref<1536x128xbf16, #tpu.memory_space<vmem>>, vector<64x128xbf16>
    %cst_11 = arith.constant dense<0.000000e+00> : vector<64x64xf32>
    %15 = tpu.matmul %14, %8, %cst_11 {dimension_numbers = #tpu.dot_dimension_numbers<[1], [0], [0], [1], [0, 0, 1, 1], [], []>} : vector<64x128xbf16>, vector<128x64xbf16>, vector<64x64xf32> -> vector<64x64xf32>
    %16 = arith.truncf %15 : vector<64x64xf32> to vector<64x64xbf16>
    %c144 = arith.constant 144 : index
    %c0_12 = arith.constant 0 : index
    %17 = vector.load %arg3[%c144, %c0_12] : memref<1536x128xbf16, #tpu.memory_space<vmem>>, vector<64x128xbf16>
    %cst_13 = arith.constant dense<0.000000e+00> : vector<64x128xf32>
    %18 = tpu.matmul %16, %17, %cst_13 {dimension_numbers = #tpu.dot_dimension_numbers<[1], [0], [0], [1], [0, 0, 1, 1], [], []>} : vector<64x64xbf16>, vector<64x128xbf16>, vector<64x128xf32> -> vector<64x128xf32>
    %19 = arith.addf %13, %18 : vector<64x128xf32>
    %c336 = arith.constant 336 : index
    %c0_14 = arith.constant 0 : index
    %20 = vector.load %arg3[%c336, %c0_14] : memref<1536x128xbf16, #tpu.memory_space<vmem>>, vector<64x128xbf16>
    %cst_15 = arith.constant dense<0.000000e+00> : vector<64x64xf32>
    %21 = tpu.matmul %20, %8, %cst_15 {dimension_numbers = #tpu.dot_dimension_numbers<[1], [0], [0], [1], [0, 0, 1, 1], [], []>} : vector<64x128xbf16>, vector<128x64xbf16>, vector<64x64xf32> -> vector<64x64xf32>
    %22 = arith.truncf %21 : vector<64x64xf32> to vector<64x64xbf16>
    %c272 = arith.constant 272 : index
    %c0_16 = arith.constant 0 : index
    %23 = vector.load %arg3[%c272, %c0_16] : memref<1536x128xbf16, #tpu.memory_space<vmem>>, vector<64x128xbf16>
    %cst_17 = arith.constant dense<0.000000e+00> : vector<64x128xf32>
    %24 = tpu.matmul %22, %23, %cst_17 {dimension_numbers = #tpu.dot_dimension_numbers<[1], [0], [0], [1], [0, 0, 1, 1], [], []>} : vector<64x64xbf16>, vector<64x128xbf16>, vector<64x128xf32> -> vector<64x128xf32>
    %25 = arith.addf %19, %24 : vector<64x128xf32>
    %c0_18 = arith.constant 0 : index
    %c128 = arith.constant 128 : index
    %26 = vector.load %arg4[%c0_18, %c128] : memref<1x896xf32, #tpu.memory_space<vmem>>, vector<1x128xf32>
    %27 = vector.broadcast %26 : vector<1x128xf32> to vector<64x128xf32>
    %28 = arith.addf %25, %27 : vector<64x128xf32>
    %cst_19 = arith.constant 0.000000e+00 : f32
    %29 = vector.broadcast %cst_19 : f32 to vector<64x128xf32>
    %30 = arith.maximumf %28, %29 : vector<64x128xf32>
    %31 = arith.truncf %30 : vector<64x128xf32> to vector<64x128xbf16>
    %c400 = arith.constant 400 : index
    %c0_20 = arith.constant 0 : index
    %32 = vector.load %arg3[%c400, %c0_20] : memref<1536x128xbf16, #tpu.memory_space<vmem>>, vector<32x64xbf16>
    %cst_21 = arith.constant dense<0.000000e+00> : vector<32x128xf32>
    %33 = tpu.matmul %32, %31, %cst_21 {dimension_numbers = #tpu.dot_dimension_numbers<[1], [0], [0], [1], [0, 0, 1, 1], [], []>} : vector<32x64xbf16>, vector<64x128xbf16>, vector<32x128xf32> -> vector<32x128xf32>
    %34 = arith.truncf %33 : vector<32x128xf32> to vector<32x128xbf16>
    %c0_22 = arith.constant 0 : index
    %c0_23 = arith.constant 0 : index
    %35 = vector.load %arg2[%c0_22, %c0_23] : memref<384x256xbf16, #tpu.memory_space<vmem>>, vector<128x256xbf16>
    %cst_24 = arith.constant dense<0.000000e+00> : vector<32x256xf32>
    %36 = tpu.matmul %34, %35, %cst_24 {dimension_numbers = #tpu.dot_dimension_numbers<[1], [0], [0], [1], [0, 0, 1, 1], [], []>} : vector<32x128xbf16>, vector<128x256xbf16>, vector<32x256xf32> -> vector<32x256xf32>
    %c432 = arith.constant 432 : index
    %c0_25 = arith.constant 0 : index
    %37 = vector.load %arg3[%c432, %c0_25] : memref<1536x128xbf16, #tpu.memory_space<vmem>>, vector<32x64xbf16>
    %cst_26 = arith.constant dense<0.000000e+00> : vector<32x128xf32>
    %38 = tpu.matmul %37, %31, %cst_26 {dimension_numbers = #tpu.dot_dimension_numbers<[1], [0], [0], [1], [0, 0, 1, 1], [], []>} : vector<32x64xbf16>, vector<64x128xbf16>, vector<32x128xf32> -> vector<32x128xf32>
    %39 = arith.truncf %38 : vector<32x128xf32> to vector<32x128xbf16>
    %c128_27 = arith.constant 128 : index
    %c0_28 = arith.constant 0 : index
    %40 = vector.load %arg2[%c128_27, %c0_28] : memref<384x256xbf16, #tpu.memory_space<vmem>>, vector<128x256xbf16>
    %cst_29 = arith.constant dense<0.000000e+00> : vector<32x256xf32>
    %41 = tpu.matmul %39, %40, %cst_29 {dimension_numbers = #tpu.dot_dimension_numbers<[1], [0], [0], [1], [0, 0, 1, 1], [], []>} : vector<32x128xbf16>, vector<128x256xbf16>, vector<32x256xf32> -> vector<32x256xf32>
    %42 = arith.addf %36, %41 : vector<32x256xf32>
    %c464 = arith.constant 464 : index
    %c0_30 = arith.constant 0 : index
    %43 = vector.load %arg3[%c464, %c0_30] : memref<1536x128xbf16, #tpu.memory_space<vmem>>, vector<32x64xbf16>
    %cst_31 = arith.constant dense<0.000000e+00> : vector<32x128xf32>
    %44 = tpu.matmul %43, %31, %cst_31 {dimension_numbers = #tpu.dot_dimension_numbers<[1], [0], [0], [1], [0, 0, 1, 1], [], []>} : vector<32x64xbf16>, vector<64x128xbf16>, vector<32x128xf32> -> vector<32x128xf32>
    %45 = arith.truncf %44 : vector<32x128xf32> to vector<32x128xbf16>
    %c256 = arith.constant 256 : index
    %c0_32 = arith.constant 0 : index
    %46 = vector.load %arg2[%c256, %c0_32] : memref<384x256xbf16, #tpu.memory_space<vmem>>, vector<128x256xbf16>
    %cst_33 = arith.constant dense<0.000000e+00> : vector<32x256xf32>
    %47 = tpu.matmul %45, %46, %cst_33 {dimension_numbers = #tpu.dot_dimension_numbers<[1], [0], [0], [1], [0, 0, 1, 1], [], []>} : vector<32x128xbf16>, vector<128x256xbf16>, vector<32x256xf32> -> vector<32x256xf32>
    %48 = arith.addf %42, %47 : vector<32x256xf32>
    %c0_34 = arith.constant 0 : index
    %c256_35 = arith.constant 256 : index
    %49 = vector.load %arg4[%c0_34, %c256_35] : memref<1x896xf32, #tpu.memory_space<vmem>>, vector<1x256xf32>
    %50 = vector.broadcast %49 : vector<1x256xf32> to vector<32x256xf32>
    %51 = arith.addf %48, %50 : vector<32x256xf32>
    %cst_36 = arith.constant 0.000000e+00 : f32
    %52 = vector.broadcast %cst_36 : f32 to vector<32x256xf32>
    %53 = arith.maximumf %51, %52 : vector<32x256xf32>
    %54 = arith.truncf %53 : vector<32x256xf32> to vector<32x256xbf16>
    %c688 = arith.constant 688 : index
    %c0_37 = arith.constant 0 : index
    %55 = vector.load %arg3[%c688, %c0_37] : memref<1536x128xbf16, #tpu.memory_space<vmem>>, vector<256x128xbf16>
    %cst_38 = arith.constant dense<0.000000e+00> : vector<32x128xf32>
    %56 = tpu.matmul %54, %55, %cst_38 {dimension_numbers = #tpu.dot_dimension_numbers<[1], [0], [0], [1], [0, 0, 1, 1], [], []>} : vector<32x256xbf16>, vector<256x128xbf16>, vector<32x128xf32> -> vector<32x128xf32>
    %57 = arith.truncf %56 : vector<32x128xf32> to vector<32x128xbf16>
    %c1072 = arith.constant 1072 : index
    %c0_39 = arith.constant 0 : index
    %58 = vector.load %arg3[%c1072, %c0_39] : memref<1536x128xbf16, #tpu.memory_space<vmem>>, vector<64x32xbf16>
    %cst_40 = arith.constant dense<0.000000e+00> : vector<64x128xf32>
    %59 = tpu.matmul %58, %57, %cst_40 {dimension_numbers = #tpu.dot_dimension_numbers<[1], [0], [0], [1], [0, 0, 1, 1], [], []>} : vector<64x32xbf16>, vector<32x128xbf16>, vector<64x128xf32> -> vector<64x128xf32>
    %c496 = arith.constant 496 : index
    %c0_41 = arith.constant 0 : index
    %60 = vector.load %arg3[%c496, %c0_41] : memref<1536x128xbf16, #tpu.memory_space<vmem>>, vector<128x128xbf16>
    %cst_42 = arith.constant dense<0.000000e+00> : vector<64x128xf32>
    %61 = tpu.matmul %31, %60, %cst_42 {dimension_numbers = #tpu.dot_dimension_numbers<[1], [0], [0], [1], [0, 0, 1, 1], [], []>} : vector<64x128xbf16>, vector<128x128xbf16>, vector<64x128xf32> -> vector<64x128xf32>
    %62 = arith.addf %59, %61 : vector<64x128xf32>
    %c0_43 = arith.constant 0 : index
    %c512 = arith.constant 512 : index
    %63 = vector.load %arg4[%c0_43, %c512] : memref<1x896xf32, #tpu.memory_space<vmem>>, vector<1x128xf32>
    %64 = vector.broadcast %63 : vector<1x128xf32> to vector<64x128xf32>
    %65 = arith.addf %62, %64 : vector<64x128xf32>
    %cst_44 = arith.constant 0.000000e+00 : f32
    %66 = vector.broadcast %cst_44 : f32 to vector<64x128xf32>
    %67 = arith.maximumf %65, %66 : vector<64x128xf32>
    %68 = arith.truncf %67 : vector<64x128xf32> to vector<64x128xbf16>
    %c944 = arith.constant 944 : index
    %c0_45 = arith.constant 0 : index
    %69 = vector.load %arg3[%c944, %c0_45] : memref<1536x128xbf16, #tpu.memory_space<vmem>>, vector<128x64xbf16>
    %cst_46 = arith.constant dense<0.000000e+00> : vector<64x64xf32>
    %70 = tpu.matmul %68, %69, %cst_46 {dimension_numbers = #tpu.dot_dimension_numbers<[1], [0], [0], [1], [0, 0, 1, 1], [], []>} : vector<64x128xbf16>, vector<128x64xbf16>, vector<64x64xf32> -> vector<64x64xf32>
    %71 = arith.truncf %70 : vector<64x64xf32> to vector<64x64xbf16>
    %c1136 = arith.constant 1136 : index
    %c0_47 = arith.constant 0 : index
    %72 = vector.load %arg3[%c1136, %c0_47] : memref<1536x128xbf16, #tpu.memory_space<vmem>>, vector<128x64xbf16>
    %cst_48 = arith.constant dense<0.000000e+00> : vector<128x64xf32>
    %73 = tpu.matmul %72, %71, %cst_48 {dimension_numbers = #tpu.dot_dimension_numbers<[1], [0], [0], [1], [0, 0, 1, 1], [], []>} : vector<128x64xbf16>, vector<64x64xbf16>, vector<128x64xf32> -> vector<128x64xf32>
    %c624 = arith.constant 624 : index
    %c0_49 = arith.constant 0 : index
    %74 = vector.load %arg3[%c624, %c0_49] : memref<1536x128xbf16, #tpu.memory_space<vmem>>, vector<64x64xbf16>
    %cst_50 = arith.constant dense<0.000000e+00> : vector<128x64xf32>
    %75 = tpu.matmul %8, %74, %cst_50 {dimension_numbers = #tpu.dot_dimension_numbers<[1], [0], [0], [1], [0, 0, 1, 1], [], []>} : vector<128x64xbf16>, vector<64x64xbf16>, vector<128x64xf32> -> vector<128x64xf32>
    %76 = arith.addf %73, %75 : vector<128x64xf32>
    %c0_51 = arith.constant 0 : index
    %c640 = arith.constant 640 : index
    %77 = vector.load %arg4[%c0_51, %c640] : memref<1x896xf32, #tpu.memory_space<vmem>>, vector<1x64xf32>
    %78 = vector.broadcast %77 : vector<1x64xf32> to vector<128x64xf32>
    %79 = arith.addf %76, %78 : vector<128x64xf32>
    %cst_52 = arith.constant 0.000000e+00 : f32
    %80 = vector.broadcast %cst_52 : f32 to vector<128x64xf32>
    %81 = arith.maximumf %79, %80 : vector<128x64xf32>
    %82 = arith.truncf %81 : vector<128x64xf32> to vector<128x64xbf16>
    %c1280 = arith.constant 1280 : index
    %c0_53 = arith.constant 0 : index
    %83 = vector.load %arg3[%c1280, %c0_53] : memref<1536x128xbf16, #tpu.memory_space<vmem>>, vector<64x64xbf16>
    %cst_54 = arith.constant dense<0.000000e+00> : vector<128x64xf32>
    %84 = tpu.matmul %82, %83, %cst_54 {dimension_numbers = #tpu.dot_dimension_numbers<[1], [0], [0], [1], [0, 0, 1, 1], [], []>} : vector<128x64xbf16>, vector<64x64xbf16>, vector<128x64xf32> -> vector<128x64xf32>
    %85 = arith.truncf %84 : vector<128x64xf32> to vector<128x64xbf16>
    %c1344 = arith.constant 1344 : index
    %c0_55 = arith.constant 0 : index
    %86 = vector.load %arg3[%c1344, %c0_55] : memref<1536x128xbf16, #tpu.memory_space<vmem>>, vector<128x64xbf16>
    %87 = arith.mulf %85, %86 : vector<128x64xbf16>
    %c1264 = arith.constant 1264 : index
    %c0_56 = arith.constant 0 : index
    %88 = vector.load %arg3[%c1264, %c0_56] : memref<1536x128xbf16, #tpu.memory_space<vmem>>, vector<8x128xbf16>
    %cst_57 = arith.constant dense<0.000000e+00> : vector<8x64xf32>
    %89 = tpu.matmul %88, %87, %cst_57 {dimension_numbers = #tpu.dot_dimension_numbers<[1], [0], [0], [1], [0, 0, 1, 1], [], []>} : vector<8x128xbf16>, vector<128x64xbf16>, vector<8x64xf32> -> vector<8x64xf32>
    %90 = arith.truncf %89 : vector<8x64xf32> to vector<8x64xbf16>
    %c1472 = arith.constant 1472 : index
    %c0_58 = arith.constant 0 : index
    %91 = vector.load %arg3[%c1472, %c0_58] : memref<1536x128xbf16, #tpu.memory_space<vmem>>, vector<64x128xbf16>
    %cst_59 = arith.constant dense<0.000000e+00> : vector<8x128xf32>
    %92 = tpu.matmul %90, %91, %cst_59 {dimension_numbers = #tpu.dot_dimension_numbers<[1], [0], [0], [1], [0, 0, 1, 1], [], []>} : vector<8x64xbf16>, vector<64x128xbf16>, vector<8x128xf32> -> vector<8x128xf32>
    %c0_60 = arith.constant 0 : index
    %c768 = arith.constant 768 : index
    %93 = vector.load %arg4[%c0_60, %c768] : memref<1x896xf32, #tpu.memory_space<vmem>>, vector<1x128xf32>
    %94 = vector.broadcast %93 : vector<1x128xf32> to vector<8x128xf32>
    %95 = arith.addf %92, %94 : vector<8x128xf32>
    %c0_61 = arith.constant 0 : index
    %c0_62 = arith.constant 0 : index
    %c0_63 = arith.constant 0 : index
    %96 = vector.load %arg5[%c0_61, %c0_62, %c0_63] : memref<1x8x128xf32, #tpu.memory_space<vmem>>, vector<1x8x128xf32>
    %97 = vector.shape_cast %96 : vector<1x8x128xf32> to vector<8x128xf32>
    %98 = vector.shape_cast %95 : vector<8x128xf32> to vector<1x8x128xf32>
    tpu.vector_store %arg5[%c0_61, %c0_62, %c0_63], %98 {strides = array<i32>} : memref<1x8x128xf32, #tpu.memory_space<vmem>>, vector<1x8x128xf32>,
    return
  }
  func.func @transform_0(%arg0: i32) -> (i32, i32) {
    %c0_i32 = arith.constant 0 : i32
    %c0_i32_0 = arith.constant 0 : i32
    return %arg0, %c0_i32 : i32, i32
  }
  func.func @transform_1(%arg0: i32) -> (i32, i32) {
    %c0_i32 = arith.constant 0 : i32
    %c0_i32_0 = arith.constant 0 : i32
    %c0_i32_1 = arith.constant 0 : i32
    return %c0_i32, %c0_i32_0 : i32, i32
  }
  func.func @transform_2(%arg0: i32) -> (i32, i32) {
    %c0_i32 = arith.constant 0 : i32
    %c0_i32_0 = arith.constant 0 : i32
    %c0_i32_1 = arith.constant 0 : i32
    return %c0_i32, %c0_i32_0 : i32, i32
  }
  func.func @transform_3(%arg0: i32) -> (i32, i32) {
    %c0_i32 = arith.constant 0 : i32
    %c0_i32_0 = arith.constant 0 : i32
    %c0_i32_1 = arith.constant 0 : i32
    return %c0_i32, %c0_i32_0 : i32, i32
  }
  func.func @transform_4(%arg0: i32) -> (i32, i32, i32) {
    %c0_i32 = arith.constant 0 : i32
    %c0_i32_0 = arith.constant 0 : i32
    %c0_i32_1 = arith.constant 0 : i32
    return %arg0, %c0_i32, %c0_i32_0 : i32, i32, i32
  }
}

</mosaic_0001>

<bundles_post_ra>
// kernel: tpu_custom_call.1
= control target key start
LH: loop header
LB: loop body
LE: loop exit
PB: predicated region body
PF: predicated region fallthrough
CT: control target
= control target key end

     0   :  { %9 = vsyncpa [#allocation3], 0  ;;  %s4271_s0 = inlined_call_operand.vmem [shape: bf16[128,12], index: 0, kind: input, shape index: {}]   ;;  %s4272_s1 = inlined_call_operand.hbm [shape: bf16[384,256], index: 1, kind: input, shape index: {}]   ;;  %s4273_s2 = inlined_call_operand.hbm [shape: bf16[1536,128], index: 2, kind: input, shape index: {}]   ;;  %s4274_s3 = inlined_call_operand.vmem [shape: f32[1,896], index: 3, kind: input, shape index: {}]   ;;  %s4275_s4 = inlined_call_operand.hbm [shape: f32[1,8,128], index: 4, kind: output, shape index: {}]  }
   0x1   :  { %10 = vsyncpa [#allocation6], 0 }
   0x2   :  { %11 = vsyncpa [#allocation4], 0  ;;  %s3954_s15 = smov [#allocation2]  }
   0x3   :  { %s19_s16 = sshll.u32 %s3954_s15, 4  ;;  %s20_s16 = int_to_ptr.vmem [resolvable:$true] %s19_s16 }
   0x4   :  { %s3896_s17 = scalar_lea.vmem %s20_s16, 6144  ;;  %p3901_p1 = scmp.lt.s32.totalorder %s20_s16, %s20_s16 }
   0x5   :  { %p3897_p0 = scmp.ne.s32.totalorder %s20_s16, %s3896_s17  ;;  %p3902_p2 = scmp.lt.s32.totalorder %s3896_s17, %s3896_s17 }
   0x7   :  { %p3903_p3 = por %p3902_p2, %p3901_p1 }
   0x9   :  { %p3904_p4 = pnand %p3903_p3, %p3897_p0 }
   0xb   :  { %3907 = shalt.err (!%p3904_p4)
}
   0xc   :  { %s3955_s18 = smov 128   ;;  %s3956_s19 = smov 8  }
   0xd   :  { %25 = dma.hbm_to_vmem [thread:$0]  %s4272_s1, 6144, %s20_s16, [#allocation3], %s3955_s18, %s3955_s18, %s3956_s19  }
   0xe   :  { %s3957_s22 = smov [#allocation5]  }
   0xf   :  { %s31_s23 = sshll.u32 %s3957_s22, 4  ;;  %s32_s23 = int_to_ptr.vmem [resolvable:$true] %s31_s23 }
  0x10   :  { %s3916_s24 = scalar_lea.vmem %s32_s23, 12288  ;;  %p3921_p6 = scmp.lt.s32.totalorder %s32_s23, %s32_s23 }
  0x11   :  { %p3917_p5 = scmp.ne.s32.totalorder %s32_s23, %s3916_s24  ;;  %p3922_p7 = scmp.lt.s32.totalorder %s3916_s24, %s3916_s24 }
  0x13   :  { %p3923_p8 = por %p3922_p7, %p3921_p6 }
  0x15   :  { %p3924_p9 = pnand %p3923_p8, %p3917_p5 }
  0x17   :  { %3927 = shalt.err (!%p3924_p9)
}
  0x18   :  { %s3958_s25 = smov 64   ;;  %s3959_s26 = smov 4  }
  0x19   :  { %37 = dma.hbm_to_vmem [thread:$0]  %s4273_s2, 12288, %s32_s23, [#allocation6], %s3958_s25, %s3958_s25, %s3959_s26  }
  0x1a   :  { %3948 = dma.done.wait [#allocation3], 6144  }
  0x1b   :  { %3949 = vsyncadd [#allocation3], 4294961152 }
  0x1c   :  { %3950 = dma.done.wait [#allocation6], 12288  }
  0x1d   :  { %3951 = vsyncadd [#allocation6], 4294955008  ;;  %vm142_vm0 = vcmask 1045504   ;;  %vm117_vm1 = vcmask 97280   ;;  %v3713_v0 = vld [vmem:[#allocation5] sm:$0x3f]  }
  0x1e   :  { %v3714_v1 = vld [vmem:[%s4271_s0] sm:$0xff]   ;;  %3702 = vmatprep.subr.msk.bf16.mxu0 %vm142_vm0, %v3713_v0  ;;  %v144_v2 = vsel %vm142_vm0, %v3713_v0, 0  ;;  %v3715_v3 = vld [vmem:[%s4271_s0 + $0x8] sm:$0xff]   ;;  %v3716_v4 = vld [vmem:[%s4271_s0 + $0x10] sm:$0xff]   ;;  %vm509_vm2 = vcmask 523264   ;;  %vm1969_vm3 = vcmask 261120  }
  0x1f   :  { %3365 = vmatpush3.bf16.msra.mxu0 %v144_v2  ;;  %3366 = vmatprep.mubr.msk.bf16.mxu0 %vm117_vm1, %v3714_v1  ;;  %v3717_v5 = vld [vmem:[%s4271_s0 + $0x18] sm:$0xff]   ;;  %v3718_v6 = vld [vmem:[%s4271_s0 + $0x20] sm:$0xff]   ;;  %v3719_v7 = vld [vmem:[%s4271_s0 + $0x28] sm:$0xff]   ;;  %vm3962_vm4 = vmmov 0   ;;  %s3963_s28 = smov [#allocation7]  }
  0x20   :  { %v3720_v8 = vld [vmem:[%s4271_s0 + $0x30] sm:$0xff]   ;;  %v3721_v9 = vld [vmem:[%s4271_s0 + $0x38] sm:$0xff]   ;;  %v3722_v10 = vld [vmem:[#allocation5 + $0x28] sm:$0xff]   ;;  %s2948_s1 = sshll.u32 %s3963_s28, 4  ;;  %s2949_s1 = int_to_ptr.vmem [resolvable:$true] %s2948_s1 }
  0x21   :  { %v3723_v11 = vld [vmem:[#allocation5 + $0x68] sm:$0xff]   ;;  %3398 = vmatprep.mubr.bf16.mxu1 %v3722_v10  ;;  %v2958_v25 = vld [vmem:[%s4274_s3] ss:$0 sm:$0xff]  ;;  %v3727_v10 = vld [vmem:[#allocation5 + $0x58] sm:$0xff]   ;;  %s3928_s29 = scalar_lea.vmem %s2949_s1, 128  ;;  %p3933_p11 = scmp.lt.s32.totalorder %s2949_s1, %s2949_s1 }
  0x22   :  { %3367 = vmatmul.mubr.msk.bf16.vlgmr.msra.gmra.mxu0 %vm117_vm1, %v3715_v3  ;;  %p3929_p10 = scmp.ne.s32.totalorder %s2949_s1, %s3928_s29  ;;  %p3934_p12 = scmp.lt.s32.totalorder %s3928_s29, %s3928_s29 }
  0x23   :  { %3370 = vmatprep.mubr.msk.bf16.mxu0 %vm117_vm1, %v3716_v4 }
  0x24   :  { %p3935_p13 = por %p3934_p12, %p3933_p11 }
  0x26   :  { %p3936_p0 = pnand %p3935_p13, %p3929_p10 }
  0x2a   :  { %3371 = vmatmul.mubr.msk.bf16.gmra.mxu0 %vm117_vm1, %v3717_v5  ;;  %v3726_v5 = vld [vmem:[#allocation5 + $0x60] sm:$0xff]  }
  0x2b   :  { %3374 = vmatprep.mubr.msk.bf16.mxu0 %vm117_vm1, %v3718_v6  ;;  %v3734_v6 = vld [vmem:[#allocation5 + $0x20] sm:$0xff]  }
  0x32   :  { %3375 = vmatmul.mubr.msk.bf16.gmra.mxu0 %vm117_vm1, %v3719_v7  ;;  %v3724_v7 = vld [vmem:[#allocation5 + $0x30] sm:$0xff]  }
  0x33   :  { %3378 = vmatprep.mubr.msk.bf16.mxu0 %vm117_vm1, %v3720_v8  ;;  %v3725_v8 = vld [vmem:[#allocation5 + $0x70] sm:$0xff]  }
  0x3a   :  { %3379 = vmatmul.mubr.msk.bf16.gmra.mxu0 %vm117_vm1, %v3721_v9  ;;  %v3729_v9 = vld [vmem:[#allocation5 + $0x38] sm:$0xff]  }
  0x3b   :  { %3422 = vmatprep.mubr.bf16.mxu0 %v3723_v11  ;;  %v3730_v11 = vld [vmem:[#allocation5 + $0x78] sm:$0xff]  }
  0xe2   :  { %v3368_v12 = vpop.f32.mrf.mxu0 }
  0xe3   :  { %v189_v58 = vadd.f32 %v3368_v12, %v2958_v25  ;;  %v3735_v12 = vld [vmem:[#allocation5 + $0x18] sm:$0xff]  }
  0xe4   :  { %v4027_v13 = vpop.f32.mrf.mxu0 }
  0xe5   :  { %v245_v63 = vmax.f32 %v189_v58, 0.0  ;;  %v181_v0 = vadd.f32 %v2958_v25, %v4027_v13  ;;  %v3728_v13 = vld [vmem:[#allocation5 + $0x50] sm:$0xff]  }
  0xe6   :  { %v3369_v14 = vpop.f32.mrf.mxu0 }
  0xe7   :  { %v192_v55 = vadd.f32 %v3369_v14, %v2958_v25  ;;  %v243_v3 = vmax.f32 %v181_v0, 0.0  ;;  %v3731_v14 = vld [vmem:[#allocation5 + $0x40] sm:$0xff]  }
  0xe8   :  { %v4029_v15 = vpop.f32.mrf.mxu0 }
  0xe9   :  { %v246_v60 = vmax.f32 %v192_v55, 0.0  ;;  %v184_v61 = vadd.f32 %v2958_v25, %v4029_v15  ;;  %v3732_v15 = vld [vmem:[#allocation5 + $0x80] sm:$0xff]  }
  0xea   :  { %v3372_v16 = vpop.f32.mrf.mxu0 }
  0xeb   :  { %v205_v48 = vadd.f32 %v3372_v16, %v2958_v25  ;;  %v4070_v1 = vpack.c.bf16 %v246_v60, %v245_v63  ;;  %v244_v2 = vmax.f32 %v184_v61, 0.0  ;;  %v3733_v16 = vld [vmem:[#allocation5 + $0x48] sm:$0xff]  }
  0xec   :  { %v196_v17 = vpop.f32.mrf.mxu0 }
  0xed   :  { %v249_v53 = vmax.f32 %v205_v48, 0.0  ;;  %v197_v54 = vadd.f32 %v2958_v25, %v196_v17  ;;  %v4076_v4 = vpack.c.bf16 %v244_v2, %v243_v3  ;;  %v3736_v17 = vld [vmem:[#allocation5 + $0x10] sm:$0xff]   ;;  %v3740_v48 = vld [vmem:[#allocation5 + $0xb8] sm:$0xff]  }
  0xee   :  { %v3373_v18 = vpop.f32.mrf.mxu0 }
  0xef   :  { %v208_v45 = vadd.f32 %v3373_v18, %v2958_v25  ;;  %v247_v59 = vmax.f32 %v197_v54, 0.0  ;;  %v3737_v18 = vld [vmem:[#allocation5 + $0x8] sm:$0xff]  }
  0xf0   :  { %v199_v19 = vpop.f32.mrf.mxu0  ;;  %v3745_v54 = vld [vmem:[#allocation5 + $0x88] sm:$0xff]  }
  0xf1   :  { %v250_v50 = vmax.f32 %v208_v45, 0.0  ;;  %v200_v51 = vadd.f32 %v2958_v25, %v199_v19  ;;  %v3738_v45 = vld [vmem:[#allocation5 + $0xa8] sm:$0xff]  }
  0xf2   :  { %v3376_v20 = vpop.f32.mrf.mxu0 }
  0xf3   :  { %v221_v36 = vadd.f32 %v3376_v20, %v2958_v25  ;;  %v4056_v56 = vpack.c.bf16 %v250_v50, %v249_v53  ;;  %v248_v57 = vmax.f32 %v200_v51, 0.0  ;;  %v3742_v50 = vld [vmem:[#allocation5 + $0xa0] sm:$0xff]   ;;  %v3743_v51 = vld [vmem:[#allocation5 + $0x98] sm:$0xff]   ;;  %v3744_v53 = vld [vmem:[#allocation5 + $0x90] sm:$0xff]  }
  0xf4   :  { %v212_v21 = vpop.f32.mrf.mxu0 }
  0xf5   :  { %v253_v43 = vmax.f32 %v221_v36, 0.0  ;;  %v213_v44 = vadd.f32 %v2958_v25, %v212_v21  ;;  %v4063_v62 = vpack.c.bf16 %v248_v57, %v247_v59 }
  0xf6   :  { %v3377_v22 = vpop.f32.mrf.mxu0 }
  0xf7   :  { %v224_v32 = vadd.f32 %v3377_v22, %v2958_v25  ;;  %v251_v49 = vmax.f32 %v213_v44, 0.0 }
  0xf8   :  { %v215_v23 = vpop.f32.mrf.mxu0 }
  0xf9   :  { %v254_v40 = vmax.f32 %v224_v32, 0.0  ;;  %v216_v41 = vadd.f32 %v2958_v25, %v215_v23 }
  0xfa   :  { %v3380_v24 = vpop.f32.mrf.mxu0 }
  0xfb   :  { %v237_v27 = vadd.f32 %v3380_v24, %v2958_v25  ;;  %v4044_v46 = vpack.c.bf16 %v254_v40, %v253_v43  ;;  %v252_v47 = vmax.f32 %v216_v41, 0.0 }
  0xfc   :  { %v228_v26 = vpop.f32.mrf.mxu0 }
  0xfd   :  { %v229_v29 = vadd.f32 %v2958_v25, %v228_v26  ;;  %v257_v33 = vmax.f32 %v237_v27, 0.0  ;;  %v4050_v52 = vpack.c.bf16 %v252_v47, %v251_v49  ;;  %v3739_v47 = vld [vmem:[#allocation5 + $0xb0] sm:$0xff]   ;;  %v3741_v49 = vld [vmem:[#allocation5 + $0xc0] sm:$0xff]  }
  0xfe   :  { %v3381_v28 = vpop.f32.mrf.mxu0 }
  0xff   :  { %v240_v30 = vadd.f32 %v3381_v28, %v2958_v25  ;;  %v255_v37 = vmax.f32 %v229_v29, 0.0 }
 0x100   :  { %v231_v31 = vpop.f32.mrf.mxu0 }
 0x101   :  { %v258_v34 = vmax.f32 %v240_v30, 0.0  ;;  %v232_v35 = vadd.f32 %v2958_v25, %v231_v31 }
 0x103   :  { %v4034_v38 = vpack.c.bf16 %v258_v34, %v257_v33  ;;  %v256_v39 = vmax.f32 %v232_v35, 0.0 }
 0x105   :  { %v4036_v42 = vpack.c.bf16 %v256_v39, %v255_v37  ;;  %3382 = vmatprep.subr.bf16.mxu1 %v4034_v38  ;;  %3406 = vmatprep.subr.bf16.mxu0 %v4034_v38 }
 0x106   :  { %3383 = vmatpush3.bf16.msra.mxu1 %v4034_v38  ;;  %3407 = vmatpush3.bf16.msra.mxu0 %v4034_v38 }
 0x107   :  { %3384 = vmatprep.subr.bf16.mxu1 %v4036_v42  ;;  %3408 = vmatprep.subr.bf16.mxu0 %v4036_v42 }
 0x10a   :  { %3385 = vmatpush3.bf16.msra.mxu1 %v4036_v42  ;;  %3409 = vmatpush3.bf16.msra.mxu0 %v4036_v42 }
 0x10b   :  { %3386 = vmatprep.subr.bf16.mxu1 %v4044_v46  ;;  %3410 = vmatprep.subr.bf16.mxu0 %v4044_v46 }
 0x10e   :  { %3387 = vmatpush3.bf16.msra.mxu1 %v4044_v46  ;;  %3411 = vmatpush3.bf16.msra.mxu0 %v4044_v46 }
 0x10f   :  { %3388 = vmatprep.subr.bf16.mxu1 %v4050_v52  ;;  %3412 = vmatprep.subr.bf16.mxu0 %v4050_v52 }
 0x112   :  { %3389 = vmatpush3.bf16.msra.mxu1 %v4050_v52  ;;  %3413 = vmatpush3.bf16.msra.mxu0 %v4050_v52 }
 0x113   :  { %3390 = vmatprep.subr.bf16.mxu1 %v4056_v56  ;;  %3414 = vmatprep.subr.bf16.mxu0 %v4056_v56 }
 0x116   :  { %3391 = vmatpush3.bf16.msra.mxu1 %v4056_v56  ;;  %3415 = vmatpush3.bf16.msra.mxu0 %v4056_v56 }
 0x117   :  { %3392 = vmatprep.subr.bf16.mxu1 %v4063_v62  ;;  %3416 = vmatprep.subr.bf16.mxu0 %v4063_v62 }
 0x11a   :  { %3393 = vmatpush3.bf16.msra.mxu1 %v4063_v62  ;;  %3417 = vmatpush3.bf16.msra.mxu0 %v4063_v62 }
 0x11b   :  { %3394 = vmatprep.subr.bf16.mxu1 %v4070_v1  ;;  %3418 = vmatprep.subr.bf16.mxu0 %v4070_v1 }
 0x11e   :  { %3395 = vmatpush3.bf16.msra.mxu1 %v4070_v1  ;;  %3419 = vmatpush3.bf16.msra.mxu0 %v4070_v1 }
 0x11f   :  { %3396 = vmatprep.subr.bf16.mxu1 %v4076_v4  ;;  %3420 = vmatprep.subr.bf16.mxu0 %v4076_v4 }
 0x122   :  { %3397 = vmatpush3.bf16.msra.mxu1 %v4076_v4  ;;  %3421 = vmatpush3.bf16.msra.mxu0 %v4076_v4 }
 0x123   :  { %3430 = vmatprep.subr.bf16.mxu1 %v3726_v5  ;;  %3446 = vmatprep.subr.bf16.mxu0 %v3734_v6 }
 0x125   :  { %3399 = vmatmul.mubr.bf16.vlgmr.msra.gmra.mxu1 %v3724_v7  ;;  %3423 = vmatmul.mubr.bf16.vlgmr.msra.gmra.mxu0 %v3725_v8 }
 0x126   :  { %3431 = vmatpush3.bf16.msra.mxu1 %v3726_v5  ;;  %3402 = vmatprep.mubr.bf16.mxu1 %v3729_v9 }
 0x127   :  { %3432 = vmatprep.subr.bf16.mxu1 %v3727_v10  ;;  %3426 = vmatprep.mubr.bf16.mxu0 %v3730_v11 }
 0x128   :  { %3447 = vmatpush3.bf16.msra.mxu0 %v3734_v6 }
 0x129   :  { %3448 = vmatprep.subr.bf16.mxu0 %v3735_v12 }
 0x12a   :  { %3433 = vmatpush3.bf16.msra.mxu1 %v3727_v10 }
 0x12b   :  { %3434 = vmatprep.subr.bf16.mxu1 %v3728_v13 }
 0x12c   :  { %3449 = vmatpush3.bf16.msra.mxu0 %v3735_v12 }
 0x12d   :  { %3403 = vmatmul.mubr.bf16.gmra.mxu1 %v3731_v14  ;;  %3427 = vmatmul.mubr.bf16.gmra.mxu0 %v3732_v15  ;;  %v3746_v15 = vld [vmem:[#allocation5 + $0xc8] sm:$0xff]  }
 0x12e   :  { %3435 = vmatpush3.bf16.msra.mxu1 %v3728_v13  ;;  %3450 = vmatprep.subr.bf16.mxu0 %v3736_v17 }
 0x12f   :  { %3436 = vmatprep.subr.bf16.mxu1 %v3733_v16 }
 0x130   :  { %3451 = vmatpush3.bf16.msra.mxu0 %v3736_v17 }
 0x131   :  { %3452 = vmatprep.subr.bf16.mxu0 %v3737_v18 }
 0x132   :  { %3437 = vmatpush3.bf16.msra.mxu1 %v3733_v16  ;;  %v3747_v16 = vld [vmem:[#allocation5 + $0xd8] sm:$0xff]  }
 0x133   :  { %3462 = vmatprep.subr.bf16.mxu1 %v4034_v38 }
 0x134   :  { %3453 = vmatpush3.bf16.msra.mxu0 %v3737_v18 }
 0x135   :  { %3486 = vmatprep.subr.bf16.mxu0 %v3742_v50 }
 0x1e5   :  { %v3400_v19 = vpop.f32.mrf.mxu1  ;;  %v3424_v20 = vpop.f32.mrf.mxu0 }
 0x1e7   :  { %v333_v21 = vpop.f32.mrf.mxu1  ;;  %v442_v22 = vpop.f32.mrf.mxu0 }
 0x1e9   :  { %v3401_v23 = vpop.f32.mrf.mxu1  ;;  %v3425_v24 = vpop.f32.mrf.mxu0 }
 0x1ea   :  { %v365_v25 = vpack.c.bf16 %v3401_v23, %v3400_v19  ;;  %v474_v30 = vpack.c.bf16 %v3425_v24, %v3424_v20 }
 0x1eb   :  { %v336_v26 = vpop.f32.mrf.mxu1  ;;  %v445_v27 = vpop.f32.mrf.mxu0 }
 0x1ec   :  { %v364_v28 = vpack.c.bf16 %v336_v26, %v333_v21  ;;  %v473_v29 = vpack.c.bf16 %v445_v27, %v442_v22 }
 0x1ed   :  { %v3404_v31 = vpop.f32.mrf.mxu1  ;;  %v3428_v32 = vpop.f32.mrf.mxu0 }
 0x1ee   :  { %3438 = vmatprep.mubr.msk.bf16.mxu1 %vm509_vm2, %v473_v29  ;;  %3454 = vmatprep.mubr.msk.bf16.mxu0 %vm509_vm2, %v364_v28  ;;  %v3012_v29 = vld [vmem:[%s4274_s3 + $0x1] ss:$0 sm:$0xff] }
 0x1ef   :  { %3439 = vmatmul.mubr.msk.bf16.vlgmr.msra.gmra.mxu1 %vm509_vm2, %v474_v30  ;;  %3455 = vmatmul.mubr.msk.bf16.vlgmr.msra.gmra.mxu0 %vm509_vm2, %v365_v25  ;;  %v349_v33 = vpop.f32.mrf.mxu1  ;;  %v458_v34 = vpop.f32.mrf.mxu0 }
 0x1f0   :  { %3463 = vmatpush3.bf16.msra.mxu1 %v4034_v38  ;;  %3487 = vmatpush3.bf16.msra.mxu0 %v3742_v50 }
 0x1f1   :  { %3464 = vmatprep.subr.bf16.mxu1 %v4036_v42  ;;  %v3405_v35 = vpop.f32.mrf.mxu1  ;;  %v3429_v36 = vpop.f32.mrf.mxu0  ;;  %3488 = vmatprep.subr.bf16.mxu0 %v3743_v51 }
 0x1f2   :  { %v367_v37 = vpack.c.bf16 %v3405_v35, %v3404_v31  ;;  %v476_v39 = vpack.c.bf16 %v3429_v36, %v3428_v32 }
 0x1f3   :  { %v352_v40 = vpop.f32.mrf.mxu1  ;;  %v461_v41 = vpop.f32.mrf.mxu0 }
 0x1f4   :  { %3465 = vmatpush3.bf16.msra.mxu1 %v4036_v42  ;;  %v366_v43 = vpack.c.bf16 %v352_v40, %v349_v33  ;;  %v475_v44 = vpack.c.bf16 %v461_v41, %v458_v34  ;;  %3489 = vmatpush3.bf16.msra.mxu0 %v3743_v51 }
 0x1f5   :  { %3466 = vmatprep.subr.bf16.mxu1 %v4044_v46  ;;  %3490 = vmatprep.subr.bf16.mxu0 %v3744_v53 }
 0x1f6   :  { %3442 = vmatprep.mubr.msk.bf16.mxu1 %vm509_vm2, %v475_v44  ;;  %3458 = vmatprep.mubr.msk.bf16.mxu0 %vm509_vm2, %v366_v43 }
 0x1f7   :  { %3443 = vmatmul.mubr.msk.bf16.gmra.mxu1 %vm509_vm2, %v476_v39  ;;  %3459 = vmatmul.mubr.msk.bf16.gmra.mxu0 %vm509_vm2, %v367_v37 }
 0x1f8   :  { %3467 = vmatpush3.bf16.msra.mxu1 %v4044_v46  ;;  %3478 = vmatprep.mubr.bf16.mxu1 %v3738_v45 }
 0x1f9   :  { %3468 = vmatprep.subr.bf16.mxu1 %v4050_v52  ;;  %3491 = vmatpush3.bf16.msra.mxu0 %v3744_v53 }
 0x1fa   :  { %3492 = vmatprep.subr.bf16.mxu0 %v3745_v54 }
 0x1fc   :  { %3469 = vmatpush3.bf16.msra.mxu1 %v4050_v52 }
 0x1fd   :  { %3470 = vmatprep.subr.bf16.mxu1 %v4056_v56  ;;  %3493 = vmatpush3.bf16.msra.mxu0 %v3745_v54 }
 0x200   :  { %3471 = vmatpush3.bf16.msra.mxu1 %v4056_v56 }
 0x201   :  { %3472 = vmatprep.subr.bf16.mxu1 %v4063_v62 }
 0x204   :  { %3473 = vmatpush3.bf16.msra.mxu1 %v4063_v62 }
 0x205   :  { %3474 = vmatprep.subr.bf16.mxu1 %v4070_v1 }
 0x208   :  { %3475 = vmatpush3.bf16.msra.mxu1 %v4070_v1 }
 0x209   :  { %3476 = vmatprep.subr.bf16.mxu1 %v4076_v4 }
 0x20c   :  { %3477 = vmatpush3.bf16.msra.mxu1 %v4076_v4 }
 0x20f   :  { %3479 = vmatmul.mubr.bf16.vlgmr.msra.gmra.mxu1 %v3739_v47 }
 0x210   :  { %3482 = vmatprep.mubr.bf16.mxu1 %v3740_v48 }
 0x217   :  { %3483 = vmatmul.mubr.bf16.gmra.mxu1 %v3741_v49 }
 0x218   :  { %3522 = vmatprep.mubr.msk.bf16.mxu1 %vm509_vm2, %v3747_v16  ;;  %v3748_v16 = vld [vmem:[#allocation5 + $0xd0] sm:$0xff]  }
 0x2af   :  { %v3440_v55 = vpop.f32.mrf.mxu1  ;;  %v3456_v17 = vpop.f32.mrf.mxu0 }
 0x2b0   :  { %v666_v25 = vadd.f32 %v3456_v17, %v3440_v55  ;;  %v3749_v17 = vld [vmem:[#allocation5 + $0xe0] sm:$0xff]  }
 0x2b1   :  { %v556_v57 = vpop.f32.mrf.mxu1  ;;  %v657_v18 = vpop.f32.mrf.mxu0 }
 0x2b2   :  { %v658_v27 = vadd.f32 %v657_v18, %v556_v57  ;;  %v3750_v18 = vld [vmem:[#allocation2 + $0xf0] ss:$8 sps:$4 sm:$0xff]  }
 0x2b3   :  { %v3441_v58 = vpop.f32.mrf.mxu1  ;;  %v3457_v19 = vpop.f32.mrf.mxu0 }
 0x2b4   :  { %v669_v31 = vadd.f32 %v3457_v19, %v3441_v58  ;;  %v3774_v19 = vld [vmem:[#allocation2 + $0x70] ss:$8 sps:$4 sm:$0xff]  }
 0x2b5   :  { %v559_v59 = vpop.f32.mrf.mxu1  ;;  %v660_v20 = vpop.f32.mrf.mxu0 }
 0x2b6   :  { %v661_v34 = vadd.f32 %v660_v20, %v559_v59  ;;  %v3755_v20 = vld [vmem:[#allocation2 + $0xe4] ss:$8 sps:$4 sm:$0xff]  }
 0x2b7   :  { %v3444_v60 = vpop.f32.mrf.mxu1  ;;  %v3460_v21 = vpop.f32.mrf.mxu0 }
 0x2b8   :  { %v682_v39 = vadd.f32 %v3460_v21, %v3444_v60  ;;  %v3779_v21 = vld [vmem:[#allocation2 + $0x64] ss:$8 sps:$4 sm:$0xff]  }
 0x2b9   :  { %v572_v61 = vpop.f32.mrf.mxu1  ;;  %v673_v22 = vpop.f32.mrf.mxu0 }
 0x2ba   :  { %v674_v44 = vadd.f32 %v673_v22, %v572_v61  ;;  %v3753_v22 = vld [vmem:[#allocation2 + $0xe0] ss:$8 sps:$4 sm:$0xff]  }
 0x2bb   :  { %v3445_v63 = vpop.f32.mrf.mxu1  ;;  %v3461_v23 = vpop.f32.mrf.mxu0 }
 0x2bc   :  { %v685_v51 = vadd.f32 %v3461_v23, %v3445_v63  ;;  %v3777_v23 = vld [vmem:[#allocation2 + $0x60] ss:$8 sps:$4 sm:$0xff]  }
 0x2bd   :  { %v575_v0 = vpop.f32.mrf.mxu1  ;;  %v676_v24 = vpop.f32.mrf.mxu0 }
 0x2cf   :  { %v3480_v2 = vpop.f32.mrf.mxu1 }
 0x2d1   :  { %v754_v3 = vpop.f32.mrf.mxu1 }
 0x2d3   :  { %v3481_v5 = vpop.f32.mrf.mxu1 }
 0x2d4   :  { %v786_v8 = vpack.c.bf16 %v3481_v5, %v3480_v2  ;;  %v677_v2 = vadd.f32 %v676_v24, %v575_v0  ;;  %v3752_v0 = vld [vmem:[#allocation2 + $0xf4] ss:$8 sps:$4 sm:$0xff]  }
 0x2d5   :  { %v757_v6 = vpop.f32.mrf.mxu1  ;;  %v3758_v24 = vld [vmem:[#allocation2 + $0xd4] ss:$8 sps:$4 sm:$0xff]  }
 0x2d6   :  { %v785_v7 = vpack.c.bf16 %v757_v6, %v754_v3 }
 0x2d7   :  { %v3484_v9 = vpop.f32.mrf.mxu1 }
 0x2d8   :  { %3494 = vmatprep.mubr.msk.bf16.mxu0 %vm509_vm2, %v785_v7 }
 0x2d9   :  { %v770_v10 = vpop.f32.mrf.mxu1  ;;  %3495 = vmatmul.mubr.msk.bf16.vlgmr.msra.gmra.mxu0 %vm509_vm2, %v786_v8 }
 0x2db   :  { %v3485_v11 = vpop.f32.mrf.mxu1 }
 0x2dc   :  { %v788_v14 = vpack.c.bf16 %v3485_v11, %v3484_v9 }
 0x2dd   :  { %v773_v12 = vpop.f32.mrf.mxu1 }
 0x2de   :  { %v787_v13 = vpack.c.bf16 %v773_v12, %v770_v10 }
 0x2e0   :  { %3498 = vmatprep.mubr.msk.bf16.mxu0 %vm509_vm2, %v787_v13 }
 0x2e1   :  { %3499 = vmatmul.mubr.msk.bf16.gmra.mxu0 %vm509_vm2, %v788_v14 }
 0x2e2   :  { %3510 = vmatprep.mubr.msk.bf16.mxu0 %vm509_vm2, %v3746_v15  ;;  %v3776_v15 = vld [vmem:[#allocation2 + $0x74] ss:$8 sps:$4 sm:$0xff]  }
 0x399   :  { %v3496_v26 = vpop.f32.mrf.mxu0 }
 0x39a   :  { %v900_v28 = vadd.f32 %v3496_v26, %v666_v25  ;;  %v3782_v25 = vld [vmem:[#allocation2 + $0x54] ss:$8 sps:$4 sm:$0xff]   ;;  %v3756_v26 = vld [vmem:[#allocation2 + $0xd0] ss:$8 sps:$4 sm:$0xff]  }
 0x39b   :  { %v867_v30 = vpop.f32.mrf.mxu0 }
 0x39c   :  { %v898_v32 = vadd.f32 %v867_v30, %v658_v27  ;;  %v915_v35 = vadd.f32 %v3012_v29, %v900_v28  ;;  %v3780_v27 = vld [vmem:[#allocation2 + $0x50] ss:$8 sps:$4 sm:$0xff]   ;;  %v3761_v28 = vld [vmem:[#allocation2 + $0xc4] ss:$8 sps:$4 sm:$0xff]   ;;  %v3759_v30 = vld [vmem:[#allocation2 + $0xc0] ss:$8 sps:$4 sm:$0xff]  }
 0x39d   :  { %v3497_v33 = vpop.f32.mrf.mxu0 }
 0x39e   :  { %v901_v36 = vadd.f32 %v3497_v33, %v669_v31  ;;  %v913_v40 = vadd.f32 %v3012_v29, %v898_v32  ;;  %v923_v47 = vmax.f32 %v915_v35, 0.0  ;;  %v3783_v31 = vld [vmem:[#allocation2 + $0x40] ss:$8 sps:$4 sm:$0xff]   ;;  %v3764_v32 = vld [vmem:[#allocation2 + $0xb4] ss:$8 sps:$4 sm:$0xff]  }
 0x39f   :  { %v870_v37 = vpop.f32.mrf.mxu0  ;;  %v3788_v33 = vld [vmem:[#allocation2 + $0x34] ss:$8 sps:$4 sm:$0xff]   ;;  %v3786_v35 = vld [vmem:[#allocation2 + $0x30] ss:$8 sps:$4 sm:$0xff]  }
 0x3a0   :  { %v916_v41 = vadd.f32 %v3012_v29, %v901_v36  ;;  %v899_v43 = vadd.f32 %v870_v37, %v661_v34  ;;  %v921_v54 = vmax.f32 %v913_v40, 0.0  ;;  %v3762_v34 = vld [vmem:[#allocation2 + $0xb0] ss:$8 sps:$4 sm:$0xff]   ;;  %v3767_v36 = vld [vmem:[#allocation2 + $0xa4] ss:$8 sps:$4 sm:$0xff]  }
 0x3a1   :  { %v3500_v45 = vpop.f32.mrf.mxu0  ;;  %v3791_v37 = vld [vmem:[#allocation2 + $0x24] ss:$8 sps:$4 sm:$0xff]   ;;  %v3789_v40 = vld [vmem:[#allocation2 + $0x20] ss:$8 sps:$4 sm:$0xff]  }
 0x3a2   :  { %v924_v48 = vmax.f32 %v916_v41, 0.0  ;;  %v914_v49 = vadd.f32 %v3012_v29, %v899_v43  ;;  %v904_v50 = vadd.f32 %v3500_v45, %v682_v39  ;;  %v3765_v39 = vld [vmem:[#allocation2 + $0xa0] ss:$8 sps:$4 sm:$0xff]   ;;  %v3770_v41 = vld [vmem:[#allocation2 + $0x94] ss:$8 sps:$4 sm:$0xff]  }
 0x3a3   :  { %v883_v53 = vpop.f32.mrf.mxu0  ;;  %v3768_v43 = vld [vmem:[#allocation2 + $0x90] ss:$8 sps:$4 sm:$0xff]   ;;  %v3771_v45 = vld [vmem:[#allocation2 + $0x80] ss:$8 sps:$4 sm:$0xff]  }
 0x3a4   :  { %v4117_v55 = vpack.c.bf16 %v924_v48, %v923_v47  ;;  %v922_v57 = vmax.f32 %v914_v49, 0.0  ;;  %v902_v58 = vadd.f32 %v883_v53, %v674_v44  ;;  %v919_v60 = vadd.f32 %v3012_v29, %v904_v50  ;;  %v3773_v44 = vld [vmem:[#allocation2 + $0x84] ss:$8 sps:$4 sm:$0xff]   ;;  %v3794_v47 = vld [vmem:[#allocation2 + $0x14] ss:$8 sps:$4 sm:$0xff]  }
 0x3a5   :  { %v3501_v59 = vpop.f32.mrf.mxu0  ;;  %v3792_v48 = vld [vmem:[#allocation2 + $0x10] ss:$8 sps:$4 sm:$0xff]   ;;  %v3797_v49 = vld [vmem:[#allocation2 + $0x4] ss:$8 sps:$4 sm:$0xff]   ;;  %v3795_v50 = vld [vmem:[#allocation2] ss:$8 sps:$4 sm:$0xff]  }
 0x3a6   :  { %v4119_v3 = vpack.c.bf16 %v922_v57, %v921_v54  ;;  %v905_v5 = vadd.f32 %v3501_v59, %v685_v51  ;;  %v917_v61 = vadd.f32 %v3012_v29, %v902_v58  ;;  %v927_v9 = vmax.f32 %v919_v60, 0.0  ;;  %v3802_v53 = vld [vmem:[#allocation2 + $0x174] ss:$8 sps:$4 sm:$0xff]  }
 0x3a7   :  { %v886_v6 = vpop.f32.mrf.mxu0  ;;  %v3960_v51 = vmov 0  }
 0x3a8   :  { %v920_v7 = vadd.f32 %v3012_v29, %v905_v5  ;;  %v903_v8 = vadd.f32 %v886_v6, %v677_v2  ;;  %v925_v63 = vmax.f32 %v917_v61, 0.0 }
 0x3aa   :  { %v928_v10 = vmax.f32 %v920_v7, 0.0  ;;  %v918_v11 = vadd.f32 %v3012_v29, %v903_v8  ;;  %v3785_v29 = vld [vmem:[#allocation2 + $0x44] ss:$8 sps:$4 sm:$0xff]   ;;  %v3800_v8 = vld [vmem:[#allocation2 + $0x170] ss:$8 sps:$4 sm:$0xff]  }
 0x3ac   :  { %v4121_v12 = vpack.c.bf16 %v928_v10, %v927_v9  ;;  %v926_v13 = vmax.f32 %v918_v11, 0.0  ;;  %v3805_v9 = vld [vmem:[#allocation2 + $0x164] ss:$8 sps:$4 sm:$0xff]   ;;  %v3803_v10 = vld [vmem:[#allocation2 + $0x160] ss:$8 sps:$4 sm:$0xff]  }
 0x3ae   :  { %v4123_v14 = vpack.c.bf16 %v926_v13, %v925_v63  ;;  %3502 = vmatprep.subr.bf16.mxu0 %v4121_v12  ;;  %3514 = vmatprep.subr.bf16.mxu1 %v4121_v12  ;;  %v3798_v63 = vld [vmem:[#allocation5 + $0xe8] sm:$0xff]  }
 0x3af   :  { %3503 = vmatpush3.bf16.msra.mxu0 %v4121_v12  ;;  %3515 = vmatpush3.bf16.msra.mxu1 %v4121_v12 }
 0x3b0   :  { %3504 = vmatprep.subr.bf16.mxu0 %v4123_v14  ;;  %3516 = vmatprep.subr.bf16.mxu1 %v4123_v14 }
 0x3b3   :  { %3505 = vmatpush3.bf16.msra.mxu0 %v4123_v14  ;;  %3517 = vmatpush3.bf16.msra.mxu1 %v4123_v14 }
 0x3b4   :  { %3506 = vmatprep.subr.bf16.mxu0 %v4117_v55  ;;  %3518 = vmatprep.subr.bf16.mxu1 %v4117_v55 }
 0x3b7   :  { %3507 = vmatpush3.bf16.msra.mxu0 %v4117_v55  ;;  %3519 = vmatpush3.bf16.msra.mxu1 %v4117_v55 }
 0x3b8   :  { %3508 = vmatprep.subr.bf16.mxu0 %v4119_v3  ;;  %3520 = vmatprep.subr.bf16.mxu1 %v4119_v3 }
 0x3bb   :  { %3509 = vmatpush3.bf16.msra.mxu0 %v4119_v3  ;;  %3521 = vmatpush3.bf16.msra.mxu1 %v4119_v3 }
 0x3bc   :  { %1187 = vmatprep.subr.bf16.mxu0 %v3752_v0  ;;  %1320 = vmatprep.subr.bf16.mxu1 %v3776_v15  ;;  %v3799_v0 = vld [vmem:[#allocation5 + $0xf0] sm:$0xff]  }
 0x3bd   :  { %v3808_v15 = vld [vmem:[#allocation2 + $0x154] ss:$8 sps:$4 sm:$0xff]  }
 0x3be   :  { %3511 = vmatmul.mubr.msk.bf16.vlgmr.msra.gmra.mxu0 %vm509_vm2, %v3748_v16  ;;  %3523 = vmatmul.mubr.msk.bf16.vlgmr.msra.gmra.mxu1 %vm509_vm2, %v3749_v17  ;;  %v3806_v16 = vld [vmem:[#allocation2 + $0x150] ss:$8 sps:$4 sm:$0xff]   ;;  %v3811_v17 = vld [vmem:[#allocation2 + $0x144] ss:$8 sps:$4 sm:$0xff]  }
 0x3bf   :  { %1188 = vmatpush1.bf16.msra.mxu0 %v3750_v18  ;;  %1321 = vmatpush1.bf16.msra.mxu1 %v3774_v19  ;;  %v3809_v18 = vld [vmem:[#allocation2 + $0x140] ss:$8 sps:$4 sm:$0xff]   ;;  %v3814_v19 = vld [vmem:[#allocation2 + $0x134] ss:$8 sps:$4 sm:$0xff]  }
 0x3c0   :  { %1189 = vmatprep.subr.bf16.mxu0 %v3755_v20  ;;  %1322 = vmatprep.subr.bf16.mxu1 %v3779_v21  ;;  %v3812_v20 = vld [vmem:[#allocation2 + $0x130] ss:$8 sps:$4 sm:$0xff]   ;;  %v3817_v21 = vld [vmem:[#allocation2 + $0x124] ss:$8 sps:$4 sm:$0xff]  }
 0x3c1   :  { %1219 = vmatprep.mubr.bf16.mxu0 %v3960_v51  ;;  %1352 = vmatprep.mubr.bf16.mxu1 %v3960_v51 }
 0x3c3   :  { %1190 = vmatpush1.bf16.msra.mxu0 %v3753_v22  ;;  %1323 = vmatpush1.bf16.msra.mxu1 %v3777_v23  ;;  %v3815_v22 = vld [vmem:[#allocation2 + $0x120] ss:$8 sps:$4 sm:$0xff]   ;;  %v3820_v23 = vld [vmem:[#allocation2 + $0x114] ss:$8 sps:$4 sm:$0xff]  }
 0x3c4   :  { %1191 = vmatprep.subr.bf16.mxu0 %v3758_v24  ;;  %1324 = vmatprep.subr.bf16.mxu1 %v3782_v25  ;;  %v3818_v24 = vld [vmem:[#allocation2 + $0x110] ss:$8 sps:$4 sm:$0xff]   ;;  %v3823_v25 = vld [vmem:[#allocation2 + $0x104] ss:$8 sps:$4 sm:$0xff]  }
 0x3c7   :  { %1192 = vmatpush1.bf16.msra.mxu0 %v3756_v26  ;;  %1325 = vmatpush1.bf16.msra.mxu1 %v3780_v27  ;;  %v3821_v26 = vld [vmem:[#allocation2 + $0x100] ss:$8 sps:$4 sm:$0xff]   ;;  %v3824_v27 = vld [vmem:[#allocation5 + $0x130] sm:$0xff]  }
 0x3c8   :  { %1193 = vmatprep.subr.bf16.mxu0 %v3761_v28  ;;  %1326 = vmatprep.subr.bf16.mxu1 %v3785_v29  ;;  %v3836_v28 = vld [vmem:[#allocation5 + $0x1d0] sm:$0xff]  }
 0x3c9   :  { %v3837_v29 = vld [vmem:[#allocation5 + $0x190] sm:$0xff]  }
 0x3cb   :  { %1194 = vmatpush1.bf16.msra.mxu0 %v3759_v30  ;;  %1327 = vmatpush1.bf16.msra.mxu1 %v3783_v31  ;;  %v3838_v30 = vld [vmem:[#allocation5 + $0x1c8] sm:$0xff]  }
 0x3cc   :  { %1195 = vmatprep.subr.bf16.mxu0 %v3764_v32  ;;  %1328 = vmatprep.subr.bf16.mxu1 %v3788_v33  ;;  %v3839_v31 = vld [vmem:[#allocation5 + $0x188] sm:$0xff]   ;;  %v3840_v32 = vld [vmem:[#allocation5 + $0x1c0] sm:$0xff]  }
 0x3cd   :  { %v3841_v33 = vld [vmem:[#allocation5 + $0x180] sm:$0xff]  }
 0x3cf   :  { %1196 = vmatpush1.bf16.msra.mxu0 %v3762_v34  ;;  %1329 = vmatpush1.bf16.msra.mxu1 %v3786_v35  ;;  %v3842_v34 = vld [vmem:[#allocation5 + $0x1b8] sm:$0xff]  }
 0x3d0   :  { %1197 = vmatprep.subr.bf16.mxu0 %v3767_v36  ;;  %1330 = vmatprep.subr.bf16.mxu1 %v3791_v37  ;;  %v3843_v35 = vld [vmem:[#allocation5 + $0x178] sm:$0xff]  }
 0x3d3   :  { %1198 = vmatpush1.bf16.msra.mxu0 %v3765_v39  ;;  %1331 = vmatpush1.bf16.msra.mxu1 %v3789_v40 }
 0x3d4   :  { %1199 = vmatprep.subr.bf16.mxu0 %v3770_v41  ;;  %1332 = vmatprep.subr.bf16.mxu1 %v3794_v47 }
 0x3d7   :  { %1200 = vmatpush1.bf16.msra.mxu0 %v3768_v43  ;;  %1333 = vmatpush1.bf16.msra.mxu1 %v3792_v48 }
 0x3d8   :  { %1201 = vmatprep.subr.bf16.mxu0 %v3773_v44  ;;  %1334 = vmatprep.subr.bf16.mxu1 %v3797_v49 }
 0x3db   :  { %1202 = vmatpush1.bf16.msra.mxu0 %v3771_v45  ;;  %1335 = vmatpush1.bf16.msra.mxu1 %v3795_v50 }
 0x3dc   :  { %3526 = vmatprep.subr.bf16.mxu0 %v4121_v12  ;;  %1540 = vmatprep.subr.bf16.mxu1 %v3802_v53 }
 0x47e   :  { %v3512_v54 = vpop.f32.mrf.mxu0  ;;  %v3524_v57 = vpop.f32.mrf.mxu1 }
 0x480   :  { %v987_v58 = vpop.f32.mrf.mxu0  ;;  %v1074_v59 = vpop.f32.mrf.mxu1 }
 0x482   :  { %v3513_v2 = vpop.f32.mrf.mxu0  ;;  %v3525_v60 = vpop.f32.mrf.mxu1 }
 0x483   :  { %v1003_v11 = vpack.c.bf16 %v3513_v2, %v3512_v54  ;;  %v1090_v13 = vpack.c.bf16 %v3525_v60, %v3524_v57  ;;  %v3825_v54 = vld [vmem:[#allocation5 + $0x128] sm:$0xff]   ;;  %v3826_v57 = vld [vmem:[#allocation5 + $0x120] sm:$0xff]   ;;  %v3828_v2 = vld [vmem:[#allocation5 + $0x110] sm:$0xff]  }
 0x484   :  { %v990_v5 = vpop.f32.mrf.mxu0  ;;  %v1077_v6 = vpop.f32.mrf.mxu1  ;;  %v3829_v60 = vld [vmem:[#allocation5 + $0x108] sm:$0xff]  }
 0x485   :  { %v1002_v61 = vpack.c.bf16 %v990_v5, %v987_v58  ;;  %v1089_v7 = vpack.c.bf16 %v1077_v6, %v1074_v59  ;;  %v3827_v59 = vld [vmem:[#allocation5 + $0x118] sm:$0xff]   ;;  %v3830_v5 = vld [vmem:[#allocation5 + $0x100] sm:$0xff]   ;;  %v3832_v6 = vld [vmem:[#allocation5 + $0x150] sm:$0xff]  }
 0x487   :  { %1220 = vmatmul.mubr.bf16.vlgmr.msra.gmra.mxu0 %v1089_v7  ;;  %1353 = vmatmul.mubr.bf16.vlgmr.msra.gmra.mxu1 %v1002_v61  ;;  %v3833_v61 = vld [vmem:[#allocation5 + $0x148] sm:$0xff]   ;;  %v3835_v7 = vld [vmem:[#allocation5 + $0x138] sm:$0xff]  }
 0x488   :  { %3527 = vmatpush3.bf16.msra.mxu0 %v4121_v12  ;;  %1229 = vmatprep.mubr.bf16.mxu0 %v3960_v51 }
 0x489   :  { %3528 = vmatprep.subr.bf16.mxu0 %v4123_v14  ;;  %1362 = vmatprep.mubr.bf16.mxu1 %v3960_v51 }
 0x48a   :  { %1541 = vmatpush1.bf16.msra.mxu1 %v3800_v8 }
 0x48b   :  { %1542 = vmatprep.subr.bf16.mxu1 %v3805_v9 }
 0x48c   :  { %3529 = vmatpush3.bf16.msra.mxu0 %v4123_v14 }
 0x48d   :  { %3530 = vmatprep.subr.bf16.mxu0 %v4117_v55 }
 0x48e   :  { %1543 = vmatpush1.bf16.msra.mxu1 %v3803_v10 }
 0x48f   :  { %1230 = vmatmul.mubr.bf16.gmra.mxu0 %v1090_v13  ;;  %1363 = vmatmul.mubr.bf16.gmra.mxu1 %v1003_v11  ;;  %v1603_v11 = vlaneseq }
 0x490   :  { %3531 = vmatpush3.bf16.msra.mxu0 %v4117_v55  ;;  %3534 = vmatprep.mubr.msk.bf16.mxu0 %vm509_vm2, %v3798_v63 }
 0x491   :  { %3532 = vmatprep.subr.bf16.mxu0 %v4119_v3  ;;  %1572 = vmatprep.mubr.bf16.mxu1 %v3960_v51  ;;  %v1604_v13 = vshrl.u32 %v1603_v11, 7 }
 0x492   :  { %1544 = vmatprep.subr.bf16.mxu1 %v3808_v15 }
 0x493   :  { %1545 = vmatpush1.bf16.msra.mxu1 %v3806_v16  ;;  %v1605_v15 = vsub.s32 0, %v1604_v13 }
 0x494   :  { %3533 = vmatpush3.bf16.msra.mxu0 %v4119_v3  ;;  %1546 = vmatprep.subr.bf16.mxu1 %v3811_v17 }
 0x495   :  { %3256 = vmatprep.subr.bf16.mxu0 %v3836_v28 }
 0x497   :  { %3535 = vmatmul.mubr.msk.bf16.vlgmr.msra.gmra.mxu0 %vm509_vm2, %v3799_v0  ;;  %1547 = vmatpush1.bf16.msra.mxu1 %v3809_v18  ;;  %v1609_v18 = vsub.s32 1, %v1604_v13 }
 0x498   :  { %1548 = vmatprep.subr.bf16.mxu1 %v3814_v19  ;;  %3257 = vmatpush3.bf16.msra.mxu0 %v3837_v29 }
 0x499   :  { %3258 = vmatprep.subr.bf16.mxu0 %v3838_v30 }
 0x49b   :  { %1549 = vmatpush1.bf16.msra.mxu1 %v3812_v20 }
 0x49c   :  { %1550 = vmatprep.subr.bf16.mxu1 %v3817_v21  ;;  %3259 = vmatpush3.bf16.msra.mxu0 %v3839_v31 }
 0x49d   :  { %3260 = vmatprep.subr.bf16.mxu0 %v3840_v32 }
 0x49f   :  { %1551 = vmatpush1.bf16.msra.mxu1 %v3815_v22 }
 0x4a0   :  { %1552 = vmatprep.subr.bf16.mxu1 %v3820_v23  ;;  %3261 = vmatpush3.bf16.msra.mxu0 %v3841_v33 }
 0x4a1   :  { %3262 = vmatprep.subr.bf16.mxu0 %v3842_v34 }
 0x4a3   :  { %1553 = vmatpush1.bf16.msra.mxu1 %v3818_v24 }
 0x4a4   :  { %1554 = vmatprep.subr.bf16.mxu1 %v3823_v25  ;;  %3263 = vmatpush3.bf16.msra.mxu0 %v3843_v35 }
 0x4a7   :  { %1555 = vmatpush1.bf16.msra.mxu1 %v3821_v26 }
 0x4a8   :  { %3538 = vmatprep.subr.bf16.mxu1 %v3824_v27 }
 0x547   :  { %v4158_v36 = vpop.f32.mrf.mxu0 }
 0x549   :  { %v4160_v37 = vpop.f32.mrf.mxu0 }
 0x54b   :  { %v4162_v39 = vpop.f32.mrf.mxu0 }
 0x54d   :  { %v4164_v40 = vpop.f32.mrf.mxu0 }
 0x54f   :  { %v4166_v41 = vpop.f32.mrf.mxu0 }
 0x551   :  { %v4168_v43 = vpop.f32.mrf.mxu0 }
 0x553   :  { %v4170_v44 = vpop.f32.mrf.mxu0 }
 0x555   :  { %v4172_v45 = vpop.f32.mrf.mxu0 }
 0x557   :  { %v3536_v47 = vpop.f32.mrf.mxu0 }
 0x559   :  { %v1427_v48 = vpop.f32.mrf.mxu0 }
 0x55b   :  { %v3537_v49 = vpop.f32.mrf.mxu0 }
 0x55c   :  { %v1443_v58 = vpack.c.bf16 %v3537_v49, %v3536_v47 }
 0x55d   :  { %v1430_v50 = vpop.f32.mrf.mxu0 }
 0x55e   :  { %v1442_v53 = vpack.c.bf16 %v1430_v50, %v1427_v48 }
 0x560   :  { %1573 = vmatmul.mubr.bf16.vlgmr.msra.gmra.mxu1 %v1442_v53 }
 0x561   :  { %3539 = vmatpush3.bf16.msra.mxu1 %v3824_v27  ;;  %1582 = vmatprep.mubr.bf16.mxu1 %v3960_v51  ;;  %v3831_v51 = vld [vmem:[#allocation5 + $0xf8] sm:$0xff]  }
 0x562   :  { %3540 = vmatprep.subr.bf16.mxu1 %v3825_v54 }
 0x565   :  { %3541 = vmatpush3.bf16.msra.mxu1 %v3825_v54 }
 0x566   :  { %3542 = vmatprep.subr.bf16.mxu1 %v3826_v57 }
 0x568   :  { %1583 = vmatmul.mubr.bf16.gmra.mxu1 %v1443_v58 }
 0x569   :  { %3543 = vmatpush3.bf16.msra.mxu1 %v3826_v57  ;;  %3554 = vmatprep.mubr.bf16.mxu1 %v4119_v3  ;;  %v3834_v3 = vld [vmem:[#allocation5 + $0x140] sm:$0xff]  }
 0x56a   :  { %3544 = vmatprep.subr.bf16.mxu1 %v3827_v59 }
 0x56d   :  { %3545 = vmatpush3.bf16.msra.mxu1 %v3827_v59 }
 0x56e   :  { %3546 = vmatprep.subr.bf16.mxu1 %v3828_v2 }
 0x571   :  { %3547 = vmatpush3.bf16.msra.mxu1 %v3828_v2 }
 0x572   :  { %3548 = vmatprep.subr.bf16.mxu1 %v3829_v60 }
 0x575   :  { %3549 = vmatpush3.bf16.msra.mxu1 %v3829_v60 }
 0x576   :  { %3550 = vmatprep.subr.bf16.mxu1 %v3830_v5 }
 0x579   :  { %3551 = vmatpush3.bf16.msra.mxu1 %v3830_v5 }
 0x57a   :  { %3552 = vmatprep.subr.bf16.mxu1 %v3831_v51 }
 0x57d   :  { %3553 = vmatpush3.bf16.msra.mxu1 %v3831_v51 }
 0x57e   :  { %3598 = vmatprep.subr.bf16.mxu1 %v3832_v6 }
 0x580   :  { %3555 = vmatmul.mubr.bf16.vlgmr.msra.gmra.mxu1 %v4117_v55  ;;  %v3844_v55 = vld [vmem:[#allocation5 + $0x1b0] sm:$0xff]  }
 0x581   :  { %3558 = vmatprep.mubr.bf16.mxu1 %v4123_v14  ;;  %3599 = vmatpush3.bf16.msra.mxu1 %v3832_v6  ;;  %v3851_v14 = vld [vmem:[#allocation5 + $0x158] sm:$0xff]  }
 0x582   :  { %3600 = vmatprep.subr.bf16.mxu1 %v3833_v61  ;;  %3264 = vmatprep.subr.bf16.mxu0 %v3844_v55 }
 0x585   :  { %3601 = vmatpush3.bf16.msra.mxu1 %v3833_v61 }
 0x586   :  { %3602 = vmatprep.subr.bf16.mxu1 %v3834_v3 }
 0x588   :  { %3559 = vmatmul.mubr.bf16.gmra.mxu1 %v4121_v12  ;;  %v3845_v12 = vld [vmem:[#allocation5 + $0x170] sm:$0xff]  }
 0x589   :  { %3603 = vmatpush3.bf16.msra.mxu1 %v3834_v3  ;;  %3606 = vmatprep.mubr.msk.bf16.mxu1 %vm509_vm2, %v4076_v4  ;;  %v3847_v4 = vld [vmem:[#allocation5 + $0x168] sm:$0xff]  }
 0x58a   :  { %3604 = vmatprep.subr.bf16.mxu1 %v3835_v7  ;;  %3265 = vmatpush3.bf16.msra.mxu0 %v3845_v12 }
 0x58d   :  { %3605 = vmatpush3.bf16.msra.mxu1 %v3835_v7 }
 0x590   :  { %3607 = vmatmul.mubr.msk.bf16.vlgmr.msra.gmra.mxu1 %vm509_vm2, %v4070_v1  ;;  %v3846_v1 = vld [vmem:[#allocation5 + $0x1a8] sm:$0xff]  }
 0x591   :  { %3610 = vmatprep.mubr.msk.bf16.mxu1 %vm509_vm2, %v4063_v62  ;;  %3266 = vmatprep.subr.bf16.mxu0 %v3846_v1  ;;  %v3848_v62 = vld [vmem:[#allocation5 + $0x1a0] sm:$0xff]  }
 0x592   :  { %3267 = vmatpush3.bf16.msra.mxu0 %v3847_v4 }
 0x593   :  { %3268 = vmatprep.subr.bf16.mxu0 %v3848_v62  ;;  %v3852_v62 = vld [vmem:[#allocation5 + $0x218] sm:$0xff]  }
 0x598   :  { %3611 = vmatmul.mubr.msk.bf16.gmra.mxu1 %vm509_vm2, %v4056_v56  ;;  %v3849_v56 = vld [vmem:[#allocation5 + $0x160] sm:$0xff]  }
 0x599   :  { %3614 = vmatprep.mubr.msk.bf16.mxu1 %vm509_vm2, %v4050_v52  ;;  %3269 = vmatpush3.bf16.msra.mxu0 %v3849_v56  ;;  %v3850_v52 = vld [vmem:[#allocation5 + $0x198] sm:$0xff]  }
 0x59a   :  { %3270 = vmatprep.subr.bf16.mxu0 %v3850_v52 }
 0x59d   :  { %3271 = vmatpush3.bf16.msra.mxu0 %v3851_v14 }
 0x5a0   :  { %3615 = vmatmul.mubr.msk.bf16.gmra.mxu1 %vm509_vm2, %v4044_v46  ;;  %v1354_v46 = vpop.f32.mrf.mxu1 }
 0x5a1   :  { %3618 = vmatprep.mubr.msk.bf16.mxu1 %vm509_vm2, %v4036_v42  ;;  %v1355_v17 = vadd.f32 %v1354_v46, %v4158_v36 }
 0x5a2   :  { %v1356_v8 = vpop.f32.mrf.mxu1 }
 0x5a3   :  { %v1357_v20 = vadd.f32 %v1356_v8, %v4160_v37 }
 0x5a4   :  { %v1358_v42 = vpop.f32.mrf.mxu1 }
 0x5a5   :  { %v1359_v24 = vadd.f32 %v1358_v42, %v4162_v39 }
 0x5a6   :  { %v1360_v9 = vpop.f32.mrf.mxu1 }
 0x5a7   :  { %v1361_v28 = vadd.f32 %v1360_v9, %v4164_v40 }
 0x5a8   :  { %3619 = vmatmul.mubr.msk.bf16.gmra.mxu1 %vm509_vm2, %v4034_v38  ;;  %v1364_v10 = vpop.f32.mrf.mxu1  ;;  %v1601_v38 = vld [vmem:[%s4274_s3 + $0x2] sm:$0x3] }
 0x5a9   :  { %v1606_v22 = vrot.slane %v1601_v38, %v1605_v15  ;;  %v1610_v26 = vrot.slane %v1601_v38, %v1609_v18  ;;  %v1365_v32 = vadd.f32 %v1364_v10, %v4166_v41  ;;  %v3853_v38 = vld [vmem:[#allocation5 + $0x220] sm:$0xff]   ;;  %v3857_v18 = vld [vmem:[#allocation5 + $0x208] sm:$0xff]  }
 0x5aa   :  { %v1366_v63 = vpop.f32.mrf.mxu1 }
 0x5ab   :  { %v1367_v36 = vadd.f32 %v1366_v63, %v4168_v43 }
 0x5ac   :  { %v1368_v0 = vpop.f32.mrf.mxu1 }
 0x5ad   :  { %v1369_v50 = vadd.f32 %v1368_v0, %v4170_v44 }
 0x5ae   :  { %v1370_v16 = vpop.f32.mrf.mxu1 }
 0x5af   :  { %v1371_v41 = vadd.f32 %v1370_v16, %v4172_v45  ;;  %v3856_v16 = vld [vmem:[#allocation5 + $0x210] sm:$0xff]  }
 0x620   :  { %v1574_v19 = vpop.f32.mrf.mxu1 }
 0x621   :  { %v1593_v21 = vadd.f32 %v1574_v19, %v1355_v17  ;;  %v3854_v17 = vld [vmem:[#allocation5 + $0x228] sm:$0xff]   ;;  %v3858_v19 = vld [vmem:[#allocation5 + $0x200] sm:$0xff]  }
 0x622   :  { %v1576_v23 = vpop.f32.mrf.mxu1 }
 0x623   :  { %v1594_v25 = vadd.f32 %v1576_v23, %v1357_v20  ;;  %v1613_v29 = vadd.f32 %v1606_v22, %v1593_v21  ;;  %v3855_v20 = vld [vmem:[#allocation5 + $0x230] sm:$0xff]   ;;  %v3859_v21 = vld [vmem:[#allocation5 + $0x1f8] sm:$0xff]   ;;  %v3861_v23 = vld [vmem:[#allocation5 + $0x1e8] sm:$0xff]  }
 0x624   :  { %v1578_v27 = vpop.f32.mrf.mxu1 }
 0x625   :  { %v1595_v30 = vadd.f32 %v1578_v27, %v1359_v24  ;;  %v1614_v33 = vadd.f32 %v1610_v26, %v1594_v25  ;;  %v1621_v47 = vmax.f32 %v1613_v29, 0.0  ;;  %v3862_v24 = vld [vmem:[#allocation5 + $0x1e0] sm:$0xff]   ;;  %v3863_v25 = vld [vmem:[#allocation5 + $0x1d8] sm:$0xff]  }
 0x626   :  { %v1580_v31 = vpop.f32.mrf.mxu1 }
 0x627   :  { %v1615_v34 = vadd.f32 %v1606_v22, %v1595_v30  ;;  %v1596_v35 = vadd.f32 %v1580_v31, %v1361_v28  ;;  %v1622_v54 = vmax.f32 %v1614_v33, 0.0 }
 0x628   :  { %v1584_v37 = vpop.f32.mrf.mxu1 }
 0x629   :  { %v1623_v48 = vmax.f32 %v1615_v34, 0.0  ;;  %v1616_v49 = vadd.f32 %v1610_v26, %v1596_v35  ;;  %v1597_v39 = vadd.f32 %v1584_v37, %v1365_v32 }
 0x62a   :  { %v1586_v53 = vpop.f32.mrf.mxu1 }
 0x62b   :  { %v1629_v40 = vpack.c.bf16 %v1623_v48, %v1621_v47  ;;  %v1624_v57 = vmax.f32 %v1616_v49, 0.0  ;;  %v1598_v58 = vadd.f32 %v1586_v53, %v1367_v36  ;;  %v1617_v2 = vadd.f32 %v1606_v22, %v1597_v39  ;;  %v3105_v36 = vld [vmem:[%s4274_s3 + $0x4] ss:$0 sm:$0xff] }
 0x62c   :  { %v1588_v59 = vpop.f32.mrf.mxu1 }
 0x62d   :  { %v1599_v60 = vadd.f32 %v1588_v59, %v1369_v50  ;;  %v1630_v5 = vpack.c.bf16 %v1624_v57, %v1622_v54  ;;  %v1618_v43 = vadd.f32 %v1610_v26, %v1598_v58  ;;  %v1625_v3 = vmax.f32 %v1617_v2, 0.0 }
 0x62e   :  { %v1590_v51 = vpop.f32.mrf.mxu1 }
 0x62f   :  { %v1619_v6 = vadd.f32 %v1606_v22, %v1599_v60  ;;  %v1600_v61 = vadd.f32 %v1590_v51, %v1371_v41  ;;  %1793 = vmatprep.mubr.bf16.mxu0 %v1630_v5  ;;  %v1626_v55 = vmax.f32 %v1618_v43, 0.0  ;;  %v3860_v22 = vld [vmem:[#allocation5 + $0x1f0] sm:$0xff]  }
 0x630   :  { %1794 = vmatmul.mubr.bf16.vlgmr.msra.gmra.mxu0 %v1629_v40 }
 0x631   :  { %v1627_v7 = vmax.f32 %v1619_v6, 0.0  ;;  %v1620_v44 = vadd.f32 %v1610_v26, %v1600_v61 }
 0x633   :  { %v1628_v12 = vmax.f32 %v1620_v44, 0.0  ;;  %v1631_v1 = vpack.c.bf16 %v1627_v7, %v1625_v3 }
 0x635   :  { %v1632_v4 = vpack.c.bf16 %v1628_v12, %v1626_v55 }
 0x637   :  { %1801 = vmatprep.mubr.bf16.mxu0 %v1632_v4 }
 0x638   :  { %1802 = vmatmul.mubr.bf16.gmra.mxu0 %v1631_v1 }
 0x639   :  { %3566 = vmatprep.mubr.msk.bf16.mxu0 %vm1969_vm3, %v3852_v62 }
 0x640   :  { %v3556_v26 = vpop.f32.mrf.mxu1 }
 0x642   :  { %v1918_v27 = vpop.f32.mrf.mxu1 }
 0x644   :  { %v3557_v28 = vpop.f32.mrf.mxu1 }
 0x646   :  { %v1921_v29 = vpop.f32.mrf.mxu1 }
 0x648   :  { %v3560_v31 = vpop.f32.mrf.mxu1 }
 0x64a   :  { %v1934_v47 = vpop.f32.mrf.mxu1 }
 0x64c   :  { %v3561_v57 = vpop.f32.mrf.mxu1 }
 0x64e   :  { %v1937_v3 = vpop.f32.mrf.mxu1 }
 0x6f0   :  { %v3272_v45 = vpop.f32.mrf.mxu0 }
 0x6f2   :  { %v3273_v56 = vpop.f32.mrf.mxu0 }
 0x6f3   :  { %v3274_v13 = vadd.f32 %v3273_v56, %v3272_v45 }
 0x6f4   :  { %v3275_v52 = vpop.f32.mrf.mxu0 }
 0x6f6   :  { %v3276_v14 = vpop.f32.mrf.mxu0 }
 0x6f7   :  { %v3277_v10 = vadd.f32 %v3276_v14, %v3275_v52 }
 0x6f8   :  { %v3278_v46 = vpop.f32.mrf.mxu0 }
 0x6f9   :  { %v1810_v15 = vpack.c.bf16 %v3277_v10, %v3274_v13 }
 0x6fa   :  { %v3279_v8 = vpop.f32.mrf.mxu0 }
 0x6fb   :  { %v3280_v11 = vadd.f32 %v3279_v8, %v3278_v46 }
 0x6fc   :  { %v3281_v42 = vpop.f32.mrf.mxu0 }
 0x6fe   :  { %v3282_v9 = vpop.f32.mrf.mxu0 }
 0x6ff   :  { %v3283_v63 = vadd.f32 %v3282_v9, %v3281_v42  ;;  %v3864_v42 = vld [vmem:[#allocation5 + $0x238] sm:$0xff]  }
 0x700   :  { %v3872_v9 = vld [vmem:[#allocation5 + $0x298] sm:$0xff]  }
 0x701   :  { %v1811_v0 = vpack.c.bf16 %v3283_v63, %v3280_v11  ;;  %3646 = vmatprep.subr.bf16.mxu1 %v3872_v9 }
 0x702   :  { %3647 = vmatpush3.bf16.msra.mxu1 %v3872_v9 }
 0x703   :  { %3562 = vmatprep.subr.bf16.mxu0 %v1811_v0 }
 0x704   :  { %3563 = vmatpush3.bf16.msra.mxu0 %v1811_v0 }
 0x705   :  { %3564 = vmatprep.subr.bf16.mxu0 %v1810_v15 }
 0x708   :  { %3565 = vmatpush3.bf16.msra.mxu0 %v1810_v15 }
 0x709   :  { %3574 = vmatprep.subr.bf16.mxu0 %v3856_v16 }
 0x70b   :  { %3567 = vmatmul.mubr.msk.bf16.vlgmr.msra.gmra.mxu0 %vm1969_vm3, %v3853_v38 }
 0x70c   :  { %3570 = vmatprep.mubr.msk.bf16.mxu0 %vm1969_vm3, %v3854_v17  ;;  %3575 = vmatpush3.bf16.msra.mxu0 %v3856_v16 }
 0x70d   :  { %3576 = vmatprep.subr.bf16.mxu0 %v3857_v18 }
 0x710   :  { %3577 = vmatpush3.bf16.msra.mxu0 %v3857_v18 }
 0x711   :  { %3578 = vmatprep.subr.bf16.mxu0 %v3858_v19 }
 0x713   :  { %3571 = vmatmul.mubr.msk.bf16.gmra.mxu0 %vm1969_vm3, %v3855_v20 }
 0x714   :  { %3579 = vmatpush3.bf16.msra.mxu0 %v3858_v19 }
 0x715   :  { %3580 = vmatprep.subr.bf16.mxu0 %v3859_v21 }
 0x718   :  { %3581 = vmatpush3.bf16.msra.mxu0 %v3859_v21  ;;  %v3865_v21 = vld [vmem:[#allocation5 + $0x240] sm:$0xff]  }
 0x719   :  { %3582 = vmatprep.subr.bf16.mxu0 %v3860_v22 }
 0x71c   :  { %3583 = vmatpush3.bf16.msra.mxu0 %v3860_v22  ;;  %v3866_v22 = vld [vmem:[#allocation5 + $0x248] sm:$0xff]  }
 0x71d   :  { %3584 = vmatprep.subr.bf16.mxu0 %v3861_v23 }
 0x720   :  { %3585 = vmatpush3.bf16.msra.mxu0 %v3861_v23  ;;  %v3867_v23 = vld [vmem:[#allocation5 + $0x250] sm:$0xff]  }
 0x721   :  { %3586 = vmatprep.subr.bf16.mxu0 %v3862_v24 }
 0x724   :  { %3587 = vmatpush3.bf16.msra.mxu0 %v3862_v24  ;;  %v3868_v24 = vld [vmem:[#allocation5 + $0x258] sm:$0xff]  }
 0x725   :  { %3588 = vmatprep.subr.bf16.mxu0 %v3863_v25 }
 0x728   :  { %3589 = vmatpush3.bf16.msra.mxu0 %v3863_v25  ;;  %v3869_v25 = vld [vmem:[#allocation5 + $0x260] sm:$0xff]  }
 0x7cb   :  { %v3568_v30 = vpop.f32.mrf.mxu0 }
 0x7cc   :  { %v2025_v34 = vadd.f32 %v3568_v30, %v3556_v26  ;;  %v3870_v26 = vld [vmem:[#allocation5 + $0x268] sm:$0xff]   ;;  %v3875_v30 = vld [vmem:[#allocation5 + $0x280] sm:$0xff]  }
 0x7cd   :  { %v2016_v32 = vpop.f32.mrf.mxu0 }
 0x7ce   :  { %v2017_v33 = vadd.f32 %v2016_v32, %v1918_v27  ;;  %v2056_v53 = vadd.f32 %v3105_v36, %v2025_v34  ;;  %v3871_v27 = vld [vmem:[#allocation5 + $0x270] sm:$0xff]  }
 0x7cf   :  { %v3569_v35 = vpop.f32.mrf.mxu0 }
 0x7d0   :  { %v2028_v37 = vadd.f32 %v3569_v35, %v3557_v28  ;;  %v2054_v49 = vadd.f32 %v3105_v36, %v2017_v33  ;;  %v2064_v5 = vmax.f32 %v2056_v53, 0.0  ;;  %v3873_v28 = vld [vmem:[#allocation5 + $0x290] sm:$0xff]  }
 0x7d1   :  { %v2019_v48 = vpop.f32.mrf.mxu0  ;;  %3648 = vmatprep.subr.bf16.mxu1 %v3873_v28 }
 0x7d2   :  { %v2057_v39 = vadd.f32 %v3105_v36, %v2028_v37  ;;  %v2020_v50 = vadd.f32 %v2019_v48, %v1921_v29  ;;  %v2062_v41 = vmax.f32 %v2054_v49, 0.0  ;;  %3649 = vmatpush3.bf16.msra.mxu1 %v3873_v28  ;;  %v3874_v29 = vld [vmem:[#allocation5 + $0x288] sm:$0xff]  }
 0x7d3   :  { %v3572_v54 = vpop.f32.mrf.mxu0  ;;  %3650 = vmatprep.subr.bf16.mxu1 %v3874_v29 }
 0x7d4   :  { %v2055_v40 = vadd.f32 %v3105_v36, %v2020_v50  ;;  %v2065_v58 = vmax.f32 %v2057_v39, 0.0  ;;  %v2041_v51 = vadd.f32 %v3572_v54, %v3560_v31  ;;  %v3608_v31 = vpop.f32.mrf.mxu1 }
 0x7d5   :  { %v2032_v59 = vpop.f32.mrf.mxu0 }
 0x7d6   :  { %v2063_v2 = vmax.f32 %v2055_v40, 0.0  ;;  %v2033_v60 = vadd.f32 %v2032_v59, %v1934_v47  ;;  %v2071_v7 = vpack.c.bf16 %v2065_v58, %v2064_v5  ;;  %v2060_v4 = vadd.f32 %v3105_v36, %v2041_v51  ;;  %3651 = vmatpush3.bf16.msra.mxu1 %v3874_v29  ;;  %v2313_v32 = vpop.f32.mrf.mxu1  ;;  %v4224_v40 = vld [vmem:[%s4274_s3 + $0x5] ss:$0 sm:$0xff] }
 0x7d7   :  { %v3573_v43 = vpop.f32.mrf.mxu0  ;;  %3652 = vmatprep.subr.bf16.mxu1 %v3875_v30 }
 0x7d8   :  { %v2044_v6 = vadd.f32 %v3573_v43, %v3561_v57  ;;  %v2070_v61 = vpack.c.bf16 %v2063_v2, %v2062_v41  ;;  %v2058_v55 = vadd.f32 %v3105_v36, %v2033_v60  ;;  %v2068_v14 = vmax.f32 %v2060_v4, 0.0  ;;  %v3609_v33 = vpop.f32.mrf.mxu1 }
 0x7d9   :  { %v2035_v44 = vpop.f32.mrf.mxu0 }
 0x7da   :  { %v2061_v12 = vadd.f32 %v3105_v36, %v2044_v6  ;;  %v2036_v1 = vadd.f32 %v2035_v44, %v1937_v3  ;;  %3590 = vmatprep.mubr.bf16.mxu0 %v2070_v61  ;;  %v2066_v56 = vmax.f32 %v2058_v55, 0.0  ;;  %3653 = vmatpush3.bf16.msra.mxu1 %v3875_v30  ;;  %v2316_v34 = vpop.f32.mrf.mxu1 }
 0x7db   :  { %3591 = vmatmul.mubr.bf16.vlgmr.msra.gmra.mxu0 %v2071_v7 }
 0x7dc   :  { %v2059_v62 = vadd.f32 %v3105_v36, %v2036_v1  ;;  %v2069_v45 = vmax.f32 %v2061_v12, 0.0  ;;  %v3612_v35 = vpop.f32.mrf.mxu1 }
 0x7de   :  { %v2067_v52 = vmax.f32 %v2059_v62, 0.0  ;;  %v2073_v8 = vpack.c.bf16 %v2069_v45, %v2068_v14  ;;  %v2329_v36 = vpop.f32.mrf.mxu1 }
 0x7e0   :  { %v2072_v46 = vpack.c.bf16 %v2067_v52, %v2066_v56  ;;  %v3613_v37 = vpop.f32.mrf.mxu1 }
 0x7e2   :  { %3594 = vmatprep.mubr.bf16.mxu0 %v2072_v46  ;;  %v2332_v47 = vpop.f32.mrf.mxu1 }
 0x7e3   :  { %3595 = vmatmul.mubr.bf16.gmra.mxu0 %v2073_v8 }
 0x7e4   :  { %3630 = vmatprep.mubr.msk.bf16.mxu0 %vm509_vm2, %v3864_v42  ;;  %v3616_v49 = vpop.f32.mrf.mxu1 }
 0x7e6   :  { %v2345_v58 = vpop.f32.mrf.mxu1 }
 0x7e8   :  { %v3617_v6 = vpop.f32.mrf.mxu1 }
 0x7ea   :  { %v2348_v56 = vpop.f32.mrf.mxu1 }
 0x89b   :  { %v3592_v10 = vpop.f32.mrf.mxu0 }
 0x89d   :  { %v2172_v11 = vpop.f32.mrf.mxu0 }
 0x89f   :  { %v3593_v63 = vpop.f32.mrf.mxu0 }
 0x8a0   :  { %v2204_v19 = vpack.c.bf16 %v3593_v63, %v3592_v10  ;;  %v3620_v63 = vpop.f32.mrf.mxu1 }
 0x8a1   :  { %v2175_v13 = vpop.f32.mrf.mxu0 }
 0x8a2   :  { %v2203_v20 = vpack.c.bf16 %v2175_v13, %v2172_v11 }
 0x8a3   :  { %v3596_v0 = vpop.f32.mrf.mxu0 }
 0x8a5   :  { %v2188_v15 = vpop.f32.mrf.mxu0 }
 0x8a7   :  { %v3597_v16 = vpop.f32.mrf.mxu0 }
 0x8a8   :  { %v2206_v38 = vpack.c.bf16 %v3597_v16, %v3596_v0 }
 0x8a9   :  { %v2191_v17 = vpop.f32.mrf.mxu0 }
 0x8aa   :  { %v2205_v18 = vpack.c.bf16 %v2191_v17, %v2188_v15  ;;  %3622 = vmatprep.subr.bf16.mxu0 %v2206_v38 }
 0x8ab   :  { %3623 = vmatpush3.bf16.msra.mxu0 %v2206_v38 }
 0x8ac   :  { %3624 = vmatprep.subr.bf16.mxu0 %v2205_v18 }
 0x8af   :  { %3625 = vmatpush3.bf16.msra.mxu0 %v2205_v18 }
 0x8b0   :  { %3626 = vmatprep.subr.bf16.mxu0 %v2204_v19 }
 0x8b3   :  { %3627 = vmatpush3.bf16.msra.mxu0 %v2204_v19 }
 0x8b4   :  { %3628 = vmatprep.subr.bf16.mxu0 %v2203_v20 }
 0x8b7   :  { %3629 = vmatpush3.bf16.msra.mxu0 %v2203_v20 }
 0x8ba   :  { %3631 = vmatmul.mubr.msk.bf16.vlgmr.msra.gmra.mxu0 %vm509_vm2, %v3865_v21 }
 0x8bb   :  { %3634 = vmatprep.mubr.msk.bf16.mxu0 %vm509_vm2, %v3866_v22  ;;  %v2361_v22 = vpop.f32.mrf.mxu1 }
 0x8c2   :  { %3635 = vmatmul.mubr.msk.bf16.gmra.mxu0 %vm509_vm2, %v3867_v23 }
 0x8c3   :  { %3638 = vmatprep.mubr.msk.bf16.mxu0 %vm509_vm2, %v3868_v24 }
 0x8ca   :  { %3639 = vmatmul.mubr.msk.bf16.gmra.mxu0 %vm509_vm2, %v3869_v25 }
 0x8cb   :  { %3642 = vmatprep.mubr.msk.bf16.mxu0 %vm509_vm2, %v3870_v26 }
 0x8d2   :  { %3643 = vmatmul.mubr.msk.bf16.gmra.mxu0 %vm509_vm2, %v3871_v27 }
 0x97a   :  { %v3632_v48 = vpop.f32.mrf.mxu0 }
 0x97b   :  { %v2483_v53 = vadd.f32 %v3632_v48, %v3608_v31  ;;  %v3621_v31 = vpop.f32.mrf.mxu1 }
 0x97c   :  { %v2474_v39 = vpop.f32.mrf.mxu0 }
 0x97d   :  { %v2475_v50 = vadd.f32 %v2474_v39, %v2313_v32  ;;  %v2546_v5 = vadd.f32 %v4224_v40, %v2483_v53 }
 0x97e   :  { %v3633_v54 = vpop.f32.mrf.mxu0 }
 0x97f   :  { %v2486_v57 = vadd.f32 %v3633_v54, %v3609_v33  ;;  %v2544_v41 = vadd.f32 %v4224_v40, %v2475_v50  ;;  %v2562_v12 = vmax.f32 %v2546_v5, 0.0  ;;  %v2364_v50 = vpop.f32.mrf.mxu1 }
 0x980   :  { %v2477_v59 = vpop.f32.mrf.mxu0 }
 0x981   :  { %v2547_v2 = vadd.f32 %v4224_v40, %v2486_v57  ;;  %v2478_v60 = vadd.f32 %v2477_v59, %v2316_v34  ;;  %v2560_v7 = vmax.f32 %v2544_v41, 0.0 }
 0x982   :  { %v3636_v51 = vpop.f32.mrf.mxu0 }
 0x983   :  { %v2545_v43 = vadd.f32 %v4224_v40, %v2478_v60  ;;  %v2563_v61 = vmax.f32 %v2547_v2, 0.0  ;;  %v2499_v1 = vadd.f32 %v3636_v51, %v3612_v35 }
 0x984   :  { %v2490_v3 = vpop.f32.mrf.mxu0 }
 0x985   :  { %v2561_v44 = vmax.f32 %v2545_v43, 0.0  ;;  %v2491_v55 = vadd.f32 %v2490_v3, %v2329_v36  ;;  %v2577_v52 = vpack.c.bf16 %v2563_v61, %v2562_v12  ;;  %v2550_v9 = vadd.f32 %v4224_v40, %v2499_v1 }
 0x986   :  { %v3637_v4 = vpop.f32.mrf.mxu0  ;;  %v3961_v3 = vmov 0.0  }
 0x987   :  { %v2576_v62 = vpack.c.bf16 %v2561_v44, %v2560_v7  ;;  %v2502_v45 = vadd.f32 %v3637_v4, %v3613_v37  ;;  %v2548_v46 = vadd.f32 %v4224_v40, %v2491_v55  ;;  %v2566_v17 = vmax.f32 %v2550_v9, 0.0  ;;  %3670 = vmatprep.subr.bf16.mxu0 %v3961_v3  ;;  %3690 = vmatprep.subr.bf16.mxu1 %v3961_v3  ;;  %v3885_v7 = vld [vmem:[#allocation5 + $0x2f0] sm:$0xff]   ;;  %v3886_v44 = vld [vmem:[#allocation5 + $0x2e8] sm:$0xff]  }
 0x988   :  { %v2493_v14 = vpop.f32.mrf.mxu0  ;;  %3686 = vmatprep.mubr.msk.bf16.mxu0 %vm3962_vm4, %v3961_v3 }
 0x989   :  { %v2551_v8 = vadd.f32 %v4224_v40, %v2502_v45  ;;  %v2494_v42 = vadd.f32 %v2493_v14, %v2332_v47  ;;  %3654 = vmatprep.mubr.msk.bf16.mxu1 %vm509_vm2, %v2576_v62  ;;  %v2564_v15 = vmax.f32 %v2548_v46, 0.0 }
 0x98a   :  { %v3640_v10 = vpop.f32.mrf.mxu0  ;;  %3655 = vmatmul.mubr.msk.bf16.vlgmr.msra.gmra.mxu1 %vm509_vm2, %v2577_v52 }
 0x98b   :  { %v2549_v11 = vadd.f32 %v4224_v40, %v2494_v42  ;;  %v2567_v13 = vmax.f32 %v2551_v8, 0.0  ;;  %v2515_v18 = vadd.f32 %v3640_v10, %v3616_v49 }
 0x98c   :  { %v2506_v0 = vpop.f32.mrf.mxu0 }
 0x98d   :  { %v2565_v16 = vmax.f32 %v2549_v11, 0.0  ;;  %v2507_v38 = vadd.f32 %v2506_v0, %v2345_v58  ;;  %v2579_v23 = vpack.c.bf16 %v2567_v13, %v2566_v17  ;;  %v2554_v28 = vadd.f32 %v4224_v40, %v2515_v18  ;;  %v3882_v11 = vld [vmem:[#allocation5 + $0x2d8] sm:$0xff]   ;;  %v3880_v18 = vld [vmem:[#allocation5 + $0x2c8] sm:$0xff]  }
 0x98e   :  { %v3641_v19 = vpop.f32.mrf.mxu0 }
 0x98f   :  { %v2578_v20 = vpack.c.bf16 %v2565_v16, %v2564_v15  ;;  %v2518_v21 = vadd.f32 %v3641_v19, %v3617_v6  ;;  %v2552_v25 = vadd.f32 %v4224_v40, %v2507_v38  ;;  %v2570_v37 = vmax.f32 %v2554_v28, 0.0  ;;  %v3883_v38 = vld [vmem:[#allocation5 + $0x2d0] sm:$0xff]  }
 0x990   :  { %v2509_v24 = vpop.f32.mrf.mxu0  ;;  %v3879_v28 = vld [vmem:[#allocation5 + $0x2b0] sm:$0xff]  }
 0x991   :  { %v2555_v26 = vadd.f32 %v4224_v40, %v2518_v21  ;;  %v2510_v27 = vadd.f32 %v2509_v24, %v2348_v56  ;;  %3658 = vmatprep.mubr.msk.bf16.mxu1 %vm509_vm2, %v2578_v20  ;;  %v2568_v34 = vmax.f32 %v2552_v25, 0.0  ;;  %v3878_v24 = vld [vmem:[#allocation5 + $0x2b8] sm:$0xff]  }
 0x992   :  { %v3644_v29 = vpop.f32.mrf.mxu0  ;;  %3659 = vmatmul.mubr.msk.bf16.gmra.mxu1 %vm509_vm2, %v2579_v23 }
 0x993   :  { %v2553_v30 = vadd.f32 %v4224_v40, %v2510_v27  ;;  %v2571_v32 = vmax.f32 %v2555_v26, 0.0  ;;  %v2531_v47 = vadd.f32 %v3644_v29, %v3620_v63 }
 0x994   :  { %v2522_v33 = vpop.f32.mrf.mxu0 }
 0x995   :  { %v2569_v35 = vmax.f32 %v2553_v30, 0.0  ;;  %v2523_v36 = vadd.f32 %v2522_v33, %v2361_v22  ;;  %v2581_v53 = vpack.c.bf16 %v2571_v32, %v2570_v37  ;;  %v2558_v41 = vadd.f32 %v4224_v40, %v2531_v47  ;;  %v3881_v22 = vld [vmem:[#allocation5 + $0x2c0] sm:$0xff]   ;;  %v3876_v30 = vld [vmem:[#allocation5 + $0x2a8] sm:$0xff]  }
 0x996   :  { %v3645_v48 = vpop.f32.mrf.mxu0  ;;  %v3887_v37 = vld [vmem:[#allocation5 + $0x2e0] sm:$0xff]  }
 0x997   :  { %v2580_v49 = vpack.c.bf16 %v2569_v35, %v2568_v34  ;;  %v2534_v39 = vadd.f32 %v3645_v48, %v3621_v31  ;;  %v2556_v57 = vadd.f32 %v4224_v40, %v2523_v36  ;;  %v2574_v43 = vmax.f32 %v2558_v41, 0.0  ;;  %v3877_v34 = vld [vmem:[#allocation5 + $0x2a0] sm:$0xff]   ;;  %v2817_v36 = vld [vmem:[#allocation5 + $0x278] sm:$0xf] }
 0x998   :  { %v2525_v54 = vpop.f32.mrf.mxu0 }
 0x999   :  { %v2559_v58 = vadd.f32 %v4224_v40, %v2534_v39  ;;  %v2526_v59 = vadd.f32 %v2525_v54, %v2364_v50  ;;  %3662 = vmatprep.mubr.msk.bf16.mxu1 %vm509_vm2, %v2580_v49  ;;  %v2572_v5 = vmax.f32 %v2556_v57, 0.0 }
 0x99a   :  { %3663 = vmatmul.mubr.msk.bf16.gmra.mxu1 %vm509_vm2, %v2581_v53  ;;  %v3163_v53 = vld [vmem:[%s4274_s3 + $0x6] ss:$0 sm:$0xff] }
 0x99b   :  { %v2557_v2 = vadd.f32 %v4224_v40, %v2526_v59  ;;  %v2575_v60 = vmax.f32 %v2559_v58, 0.0  ;;  %v3884_v40 = vld [vmem:[#allocation5 + $0x2f8] sm:$0xff]  }
 0x99c   :  { %3691 = vmatpush3.bf16.msra.mxu1 %v3884_v40 }
 0x99d   :  { %v2573_v51 = vmax.f32 %v2557_v2, 0.0  ;;  %v2583_v61 = vpack.c.bf16 %v2575_v60, %v2574_v43  ;;  %3692 = vmatprep.subr.bf16.mxu1 %v3961_v3 }
 0x99f   :  { %v2582_v6 = vpack.c.bf16 %v2573_v51, %v2572_v5 }
 0x9a0   :  { %3693 = vmatpush3.bf16.msra.mxu1 %v3885_v7 }
 0x9a1   :  { %3666 = vmatprep.mubr.msk.bf16.mxu1 %vm509_vm2, %v2582_v6  ;;  %3694 = vmatprep.subr.bf16.mxu1 %v3961_v3 }
 0x9a2   :  { %3667 = vmatmul.mubr.msk.bf16.gmra.mxu1 %vm509_vm2, %v2583_v61 }
 0x9a3   :  { %3698 = vmatprep.mubr.msk.bf16.mxu1 %vm3962_vm4, %v3961_v3 }
 0x9a4   :  { %3695 = vmatpush3.bf16.msra.mxu1 %v3886_v44 }
 0x9a5   :  { %3696 = vmatprep.subr.bf16.mxu1 %v3961_v3 }
 0x9a8   :  { %3697 = vmatpush3.bf16.msra.mxu1 %v3887_v37 }
 0xa4a   :  { %v3656_v55 = vpop.f32.mrf.mxu1 }
 0xa4c   :  { %v2674_v12 = vpop.f32.mrf.mxu1 }
 0xa4e   :  { %v3657_v1 = vpop.f32.mrf.mxu1 }
 0xa4f   :  { %v2738_v29 = vpack.c.bf16 %v3657_v1, %v3656_v55 }
 0xa50   :  { %v2677_v4 = vpop.f32.mrf.mxu1 }
 0xa51   :  { %v2810_v32 = vmul.bf16 %v3876_v30, %v2738_v29  ;;  %v2737_v33 = vpack.c.bf16 %v2677_v4, %v2674_v12 }
 0xa52   :  { %v3660_v62 = vpop.f32.mrf.mxu1 }
 0xa53   :  { %v2809_v35 = vmul.bf16 %v3877_v34, %v2737_v33 }
 0xa54   :  { %v2690_v45 = vpop.f32.mrf.mxu1 }
 0xa56   :  { %v3661_v56 = vpop.f32.mrf.mxu1 }
 0xa57   :  { %v2740_v23 = vpack.c.bf16 %v3661_v56, %v3660_v62 }
 0xa58   :  { %v2693_v52 = vpop.f32.mrf.mxu1 }
 0xa59   :  { %v2812_v26 = vmul.bf16 %v3878_v24, %v2740_v23  ;;  %v2739_v27 = vpack.c.bf16 %v2693_v52, %v2690_v45 }
 0xa5a   :  { %v3664_v14 = vpop.f32.mrf.mxu1 }
 0xa5b   :  { %v2811_v31 = vmul.bf16 %v3879_v28, %v2739_v27 }
 0xa5c   :  { %v2706_v46 = vpop.f32.mrf.mxu1 }
 0xa5e   :  { %v3665_v8 = vpop.f32.mrf.mxu1 }
 0xa5f   :  { %v2742_v17 = vpack.c.bf16 %v3665_v8, %v3664_v14 }
 0xa60   :  { %v2709_v42 = vpop.f32.mrf.mxu1 }
 0xa61   :  { %v2814_v20 = vmul.bf16 %v3880_v18, %v2742_v17  ;;  %v2741_v21 = vpack.c.bf16 %v2709_v42, %v2706_v46 }
 0xa62   :  { %v3668_v9 = vpop.f32.mrf.mxu1 }
 0xa63   :  { %v2813_v25 = vmul.bf16 %v3881_v22, %v2741_v21 }
 0xa64   :  { %v2722_v10 = vpop.f32.mrf.mxu1 }
 0xa66   :  { %v3669_v63 = vpop.f32.mrf.mxu1 }
 0xa67   :  { %v2744_v13 = vpack.c.bf16 %v3669_v63, %v3668_v9 }
 0xa68   :  { %v2725_v0 = vpop.f32.mrf.mxu1 }
 0xa69   :  { %v2816_v15 = vmul.bf16 %v3882_v11, %v2744_v13  ;;  %v2743_v16 = vpack.c.bf16 %v2725_v0, %v2722_v10 }
 0xa6b   :  { %3671 = vmatpush3.bf16.msra.mxu0 %v2816_v15  ;;  %v2815_v19 = vmul.bf16 %v3883_v38, %v2743_v16 }
 0xa6c   :  { %3672 = vmatprep.subr.bf16.mxu0 %v3961_v3 }
 0xa6f   :  { %3673 = vmatpush3.bf16.msra.mxu0 %v2815_v19 }
 0xa70   :  { %3674 = vmatprep.subr.bf16.mxu0 %v3961_v3 }
 0xa73   :  { %3675 = vmatpush3.bf16.msra.mxu0 %v2814_v20 }
 0xa74   :  { %3676 = vmatprep.subr.bf16.mxu0 %v3961_v3 }
 0xa77   :  { %3677 = vmatpush3.bf16.msra.mxu0 %v2813_v25 }
 0xa78   :  { %3678 = vmatprep.subr.bf16.mxu0 %v3961_v3 }
 0xa7b   :  { %3679 = vmatpush3.bf16.msra.mxu0 %v2812_v26 }
 0xa7c   :  { %3680 = vmatprep.subr.bf16.mxu0 %v3961_v3 }
 0xa7f   :  { %3681 = vmatpush3.bf16.msra.mxu0 %v2811_v31 }
 0xa80   :  { %3682 = vmatprep.subr.bf16.mxu0 %v3961_v3 }
 0xa83   :  { %3683 = vmatpush3.bf16.msra.mxu0 %v2810_v32 }
 0xa84   :  { %3684 = vmatprep.subr.bf16.mxu0 %v3961_v3 }
 0xa87   :  { %3685 = vmatpush3.bf16.msra.mxu0 %v2809_v35 }
 0xa8a   :  { %3687 = vmatmul.mubr.bf16.vlgmr.msra.gmra.mxu0 %v2817_v36 }
 0xb4a   :  { %v2852_v47 = vpop.f32.mrf.mxu0 }
 0xb4b   :  { %v2858_v48 = vpack.c.bf16 %v2852_v47, %v2852_v47 }
 0xb4c   :  { %v3688_v49 = vpop.f32.mrf.mxu0 }
 0xb4d   :  { %3699 = vmatmul.mubr.msk.bf16.vlgmr.msra.gmra.mxu1 %vm509_vm2, %v2858_v48 }
 0xb4e   :  { %v2855_v39 = vpop.f32.mrf.mxu0 }
 0xb50   :  { %v3689_v50 = vpop.f32.mrf.mxu0 }
 0xc0d   :  { %v2935_v54 = vpop.f32.mrf.mxu1 }
 0xc0e   :  { %v2936_v57 = vadd.f32 %v3163_v53, %v2935_v54 }
 0xc0f   :  { %v3700_v58 = vpop.f32.mrf.mxu1 }
 0xc10   :  { %2941 = vst [vmem:[#allocation7] sm:$0xff] %v2936_v57 }
 0xc11   :  { %v2938_v59 = vpop.f32.mrf.mxu1 }
 0xc12   :  { %3939 = shalt.err (!%p3936_p0)
}
 0xc13   :  { %2951 = dma.vmem_to_hbm [thread:$0]  %s2949_s1, 128, %s4275_s4, [#allocation4]   ;;  %v3701_v41 = vpop.f32.mrf.mxu1 }
 0xc14   :  { %3952 = dma.done.wait [#allocation4], 128  }
 0xc15   :  { %3953 = vsyncadd [#allocation4], 4294967168 }
 0xc16   :  { %2955 = vsyncpa [#allocation3], 1 }
 0xc17   :  { %2956 = vsyncpa [#allocation6], 1 }
 0xc18   :  { %2957 = vsyncpa [#allocation4], 1 }

</bundles_post_ra>
